<compile_context>
chip_gen: v5e
topology: v5e:2x2
jax: 0.10.0
libtpu: 0.0.40
codegen_flags: <defaults>
</compile_context>

<pallas_src>
import functools

import jax
import jax.numpy as jnp
from jax import lax
from jax.experimental import pallas as pl
from jax.experimental.pallas import tpu as pltpu


def _adown_kernel(x4_ref, w1_ref, b1_ref, w2_ref, b2_ref, o_ref,
                  *, He, We, ch, cout):
    f32 = jnp.float32
    bf16 = jnp.bfloat16
    c1 = 2 * ch

    # Polyphase planes of the raw input (H/W deinterleave done in the wrapper).
    xall = x4_ref[0].astype(f32)                   # (He, We, 4*c1)
    A = xall[:, :, 0 * c1:1 * c1]                  # x[0::2, 0::2]
    B = xall[:, :, 1 * c1:2 * c1]                  # x[0::2, 1::2]
    C = xall[:, :, 2 * c1:3 * c1]                  # x[1::2, 0::2]
    D = xall[:, :, 3 * c1:4 * c1]                  # x[1::2, 1::2]

    # 2x2 / stride-1 avg-pool as UNNORMALIZED sums (0.25 folded into weights),
    # split by avg-map row/col parity so every tap below is a contiguous slice.
    ab, cd = A + B, C + D
    ac, bd = A + C, B + D
    s_ee = ab + cd                                            # (He,   We)
    s_eo = bd[:, :We - 1, :] + ac[:, 1:, :]                   # (He,   We-1)
    s_oe = cd[:He - 1, :, :] + ab[1:, :, :]                   # (He-1, We)
    s_oo = (D[:He - 1, :We - 1, :] + C[:He - 1, 1:, :]
            + B[1:, :We - 1, :] + A[1:, 1:, :])               # (He-1, We-1)

    def taps9(ee, eo, oe, oo, pad_val):
        """The 9 taps (kh-major, kw) of a 3x3 / stride-2 / pad-1 window over
        the avg-pooled map, each of shape (He, We, ch); all contiguous."""
        rpad = jnp.full((1, We, ch), pad_val, f32)
        cpad = jnp.full((He, 1, ch), pad_val, f32)
        cpad_o = jnp.full((He - 1, 1, ch), pad_val, f32)
        rpad_w = jnp.full((1, We + 1, ch), pad_val, f32)
        p_eo = jnp.concatenate([cpad, eo, cpad], axis=1)        # (He,   We+1)
        p_oe = jnp.concatenate([rpad, oe, rpad], axis=0)        # (He+1, We)
        p_oo = jnp.concatenate([cpad_o, oo, cpad_o], axis=1)    # (He-1, We+1)
        p_oo = jnp.concatenate([rpad_w, p_oo, rpad_w], axis=0)  # (He+1, We+1)
        return [
            p_oo[0:He, 0:We, :], p_oe[0:He, :, :], p_oo[0:He, 1:We + 1, :],
            p_eo[:, 0:We, :],    ee,               p_eo[:, 1:We + 1, :],
            p_oo[1:, 0:We, :],   p_oe[1:, :, :],   p_oo[1:, 1:We + 1, :],
        ]

    # --- branch 1: 3x3 s2 p1 conv (BN + 0.25 folded) as ONE matmul + SiLU
    t1 = taps9(s_ee[..., :ch], s_eo[..., :ch],
               s_oe[..., :ch], s_oo[..., :ch], 0.0)
    patches = jnp.concatenate(t1, axis=-1).astype(bf16).reshape(He * We, 9 * ch)
    acc = jnp.dot(patches, w1_ref[...], preferred_element_type=f32)
    acc = acc + b1_ref[...]                      # (1, cout) broadcast
    y1 = acc * jax.nn.sigmoid(acc)               # SiLU, f32

    # --- branch 2: max_pool2d(k=3, s=2, p=1) + 1x1 conv (BN+0.25) + SiLU
    t2 = taps9(s_ee[..., ch:], s_eo[..., ch:],
               s_oe[..., ch:], s_oo[..., ch:], -1e30)
    mx = t2[0]
    for t in t2[1:]:
        mx = jnp.maximum(mx, t)
    z = jnp.dot(mx.astype(bf16).reshape(He * We, ch), w2_ref[...],
                preferred_element_type=f32) + b2_ref[...]
    y2 = z * jax.nn.sigmoid(z)

    # one lane-dense full-block store
    out = jnp.concatenate([y1.reshape(He, We, cout),
                           y2.reshape(He, We, cout)], axis=-1)
    o_ref[0] = out


def adown_pallas(x_nchw, w1_hwio, b1, w2_io, b2):
    """x_nchw: (N, c1, H, W); w1_hwio: (3,3,c1//2,c2//2); w2_io: (c1//2, c2//2)."""
    x = jnp.transpose(x_nchw, (0, 2, 3, 1)).astype(jnp.bfloat16)  # NHWC, bf16
    N, H, W, c1 = x.shape
    assert H % 2 == 0 and W % 2 == 0, "ADown expects even spatial dims"
    ch = c1 // 2
    cout = w1_hwio.shape[-1]
    He, We = H // 2, W // 2

    # Polyphase (even/odd row x even/odd col) deinterleave of the RAW input.
    # Pure layout plumbing in the wrapper so the kernel never issues a strided
    # read; channel-concatenated so the kernel block stays 4-D and lane-dense.
    x4 = jnp.concatenate(
        [x[:, 0::2, 0::2, :], x[:, 0::2, 1::2, :],
         x[:, 1::2, 0::2, :], x[:, 1::2, 1::2, :]], axis=-1)  # (N,He,We,4*c1)

    # Fold the avg-pool's 0.25 scale into the (already BN-folded) weights.
    # Exact: 0.25 is a power of two; max-pool commutes with a positive scale.
    w1k = (w1_hwio * 0.25).reshape(9 * ch, cout).astype(jnp.bfloat16)
    w2k = (w2_io * 0.25).astype(jnp.bfloat16)
    b1k = b1.reshape(1, cout).astype(jnp.float32)
    b2k = b2.reshape(1, cout).astype(jnp.float32)

    kernel = functools.partial(_adown_kernel, He=He, We=We, ch=ch, cout=cout)
    out = pl.pallas_call(
        kernel,
        out_shape=jax.ShapeDtypeStruct((N, He, We, 2 * cout), jnp.float32),
        grid=(N,),
        in_specs=[
            pl.BlockSpec((1, He, We, 4 * c1), lambda n: (n, 0, 0, 0)),
            pl.BlockSpec((9 * ch, cout), lambda n: (0, 0)),
            pl.BlockSpec((1, cout), lambda n: (0, 0)),
            pl.BlockSpec((ch, cout), lambda n: (0, 0)),
            pl.BlockSpec((1, cout), lambda n: (0, 0)),
        ],
        out_specs=pl.BlockSpec((1, He, We, 2 * cout), lambda n: (n, 0, 0, 0)),
        compiler_params=pltpu.CompilerParams(
            dimension_semantics=("parallel",)),
    )(x4, w1k, b1k, w2k, b2k)
    return jnp.transpose(out, (0, 3, 1, 2))  # back to NCHW
    # TODO(synk): for large YOLO feature maps add an H row-strip grid axis.


def adown_ref(x, w1_oihw, b1, w2_oihw, b2):
    """Pure-JAX (XLA) reference in NCHW, mirroring the PyTorch forward."""
    xa = lax.reduce_window(x, 0.0, lax.add, (1, 1, 2, 2), (1, 1, 1, 1),
                           'VALID') * 0.25
    ch = x.shape[1] // 2
    x1, x2 = xa[:, :ch], xa[:, ch:]
    dn = ('NCHW', 'OIHW', 'NCHW')
    y1 = lax.conv_general_dilated(x1, w1_oihw, (2, 2), ((1, 1), (1, 1)),
                                  dimension_numbers=dn)
    y1 = y1 + b1[None, :, None, None]
    y1 = y1 * jax.nn.sigmoid(y1)
    x2m = lax.reduce_window(x2, -jnp.inf, lax.max, (1, 1, 3, 3), (1, 1, 2, 2),
                            [(0, 0), (0, 0), (1, 1), (1, 1)])
    y2 = lax.conv_general_dilated(x2m, w2_oihw, (1, 1), ((0, 0), (0, 0)),
                                  dimension_numbers=dn)
    y2 = y2 + b2[None, :, None, None]
    y2 = y2 * jax.nn.sigmoid(y2)
    return jnp.concatenate([y1, y2], axis=1)


if __name__ == "__main__":
    N, c1, H, W = 2, 4, 16, 16
    c2 = 8
    ch, cout = c1 // 2, c2 // 2

    key = jax.random.PRNGKey(0)
    ks = jax.random.split(key, 11)
    x = jax.random.normal(ks[0], (N, c1, H, W), jnp.float32)
    # pre-round inputs to bf16-representable values so the bf16 kernel and the
    # f32 reference see identical operands (kernel accumulates in f32)
    x = x.astype(jnp.bfloat16).astype(jnp.float32)

    # cv1: Conv2d(ch, cout, 3, 2, 1, bias=False) + BatchNorm2d(cout) + SiLU
    w1 = jax.random.normal(ks[1], (cout, ch, 3, 3), jnp.float32) * 0.2
    g1 = 1.0 + 0.1 * jax.random.normal(ks[2], (cout,), jnp.float32)
    be1 = 0.1 * jax.random.normal(ks[3], (cout,), jnp.float32)
    m1 = 0.1 * jax.random.normal(ks[4], (cout,), jnp.float32)
    v1 = jax.random.uniform(ks[5], (cout,), jnp.float32, 0.5, 1.5)

    # cv2: Conv2d(ch, cout, 1, 1, 0, bias=False) + BatchNorm2d(cout) + SiLU
    w2 = jax.random.normal(ks[6], (cout, ch, 1, 1), jnp.float32) * 0.2
    g2 = 1.0 + 0.1 * jax.random.normal(ks[7], (cout,), jnp.float32)
    be2 = 0.1 * jax.random.normal(ks[8], (cout,), jnp.float32)
    m2 = 0.1 * jax.random.normal(ks[9], (cout,), jnp.float32)
    v2 = jax.random.uniform(ks[10], (cout,), jnp.float32, 0.5, 1.5)

    eps = 1e-3  # ultralytics BatchNorm2d eps
    s1 = g1 / jnp.sqrt(v1 + eps)
    w1_f = (w1 * s1[:, None, None, None]).astype(jnp.bfloat16).astype(jnp.float32)
    b1_f = be1 - m1 * s1
    s2 = g2 / jnp.sqrt(v2 + eps)
    w2_f = (w2 * s2[:, None, None, None]).astype(jnp.bfloat16).astype(jnp.float32)
    b2_f = be2 - m2 * s2

    w1_hwio = jnp.transpose(w1_f, (2, 3, 1, 0))        # (3, 3, ch, cout)
    w2_io = jnp.transpose(w2_f[:, :, 0, 0], (1, 0))    # (ch, cout)

    out = adown_pallas(x, w1_hwio, b1_f, w2_io, b2_f)
    out = jax.block_until_ready(out)

    ref = adown_ref(x, w1_f, b1_f, w2_f, b2_f)
    assert out.shape == (N, c2, H // 2, W // 2), out.shape
    assert jnp.allclose(out, ref, atol=2e-2, rtol=2e-2), \
        float(jnp.max(jnp.abs(out - ref)))
    print("KERNEL_OK")
</pallas_src>

<mosaic_0001>
module attributes {stable_mosaic.version = 11 : i64} {
  func.func @_adown_kernel(%arg0: i32, %arg1: memref<1x8x8x16xbf16, #tpu.memory_space<vmem>>, %arg2: memref<18x4xbf16, #tpu.memory_space<vmem>>, %arg3: memref<1x4xf32, #tpu.memory_space<vmem>>, %arg4: memref<2x4xbf16, #tpu.memory_space<vmem>>, %arg5: memref<1x4xf32, #tpu.memory_space<vmem>>, %arg6: memref<1x8x8x8xf32, #tpu.memory_space<vmem>>) attributes {dimension_semantics = [#tpu.dimension_semantics<parallel>], iteration_bounds = array<i64: 2>, scalar_prefetch = 0 : i64, scratch_operands = 0 : i64, tpu.core_type = #tpu.core_type<tc>, window_params = [{transform_indices = @transform_0, window_bounds = array<i64: 1, 8, 8, 16>}, {pipeline_mode = #tpu.pipeline_mode<synchronous>, transform_indices = @transform_1, window_bounds = array<i64: 18, 4>}, {pipeline_mode = #tpu.pipeline_mode<synchronous>, transform_indices = @transform_2, window_bounds = array<i64: 1, 4>}, {pipeline_mode = #tpu.pipeline_mode<synchronous>, transform_indices = @transform_3, window_bounds = array<i64: 2, 4>}, {pipeline_mode = #tpu.pipeline_mode<synchronous>, transform_indices = @transform_4, window_bounds = array<i64: 1, 4>}, {transform_indices = @transform_5, window_bounds = array<i64: 1, 8, 8, 8>}]} {
    %c0 = arith.constant 0 : index
    %c0_0 = arith.constant 0 : index
    %c0_1 = arith.constant 0 : index
    %c0_2 = arith.constant 0 : index
    %0 = vector.load %arg1[%c0, %c0_0, %c0_1, %c0_2] : memref<1x8x8x16xbf16, #tpu.memory_space<vmem>>, vector<1x8x8x16xbf16>
    %1 = vector.shape_cast %0 : vector<1x8x8x16xbf16> to vector<8x8x16xbf16>
    %2 = arith.extf %1 : vector<8x8x16xbf16> to vector<8x8x16xf32>
    %3 = vector.extract_strided_slice %2 {offsets = [0, 0, 0], sizes = [8, 8, 4], strides = [1, 1, 1]} : vector<8x8x16xf32> to vector<8x8x4xf32>
    %4 = vector.extract_strided_slice %2 {offsets = [0, 0, 4], sizes = [8, 8, 4], strides = [1, 1, 1]} : vector<8x8x16xf32> to vector<8x8x4xf32>
    %5 = vector.extract_strided_slice %2 {offsets = [0, 0, 8], sizes = [8, 8, 4], strides = [1, 1, 1]} : vector<8x8x16xf32> to vector<8x8x4xf32>
    %6 = vector.extract_strided_slice %2 {offsets = [0, 0, 12], sizes = [8, 8, 4], strides = [1, 1, 1]} : vector<8x8x16xf32> to vector<8x8x4xf32>
    %7 = arith.addf %3, %4 : vector<8x8x4xf32>
    %8 = arith.addf %5, %6 : vector<8x8x4xf32>
    %9 = arith.addf %3, %5 : vector<8x8x4xf32>
    %10 = arith.addf %4, %6 : vector<8x8x4xf32>
    %11 = arith.addf %7, %8 : vector<8x8x4xf32>
    %12 = vector.extract_strided_slice %10 {offsets = [0, 0, 0], sizes = [8, 7, 4], strides = [1, 1, 1]} : vector<8x8x4xf32> to vector<8x7x4xf32>
    %13 = vector.extract_strided_slice %9 {offsets = [0, 1, 0], sizes = [8, 7, 4], strides = [1, 1, 1]} : vector<8x8x4xf32> to vector<8x7x4xf32>
    %14 = arith.addf %12, %13 : vector<8x7x4xf32>
    %15 = vector.extract_strided_slice %8 {offsets = [0, 0, 0], sizes = [7, 8, 4], strides = [1, 1, 1]} : vector<8x8x4xf32> to vector<7x8x4xf32>
    %16 = vector.extract_strided_slice %7 {offsets = [1, 0, 0], sizes = [7, 8, 4], strides = [1, 1, 1]} : vector<8x8x4xf32> to vector<7x8x4xf32>
    %17 = arith.addf %15, %16 : vector<7x8x4xf32>
    %18 = vector.extract_strided_slice %6 {offsets = [0, 0, 0], sizes = [7, 7, 4], strides = [1, 1, 1]} : vector<8x8x4xf32> to vector<7x7x4xf32>
    %19 = vector.extract_strided_slice %5 {offsets = [0, 1, 0], sizes = [7, 7, 4], strides = [1, 1, 1]} : vector<8x8x4xf32> to vector<7x7x4xf32>
    %20 = arith.addf %18, %19 : vector<7x7x4xf32>
    %21 = vector.extract_strided_slice %4 {offsets = [1, 0, 0], sizes = [7, 7, 4], strides = [1, 1, 1]} : vector<8x8x4xf32> to vector<7x7x4xf32>
    %22 = arith.addf %20, %21 : vector<7x7x4xf32>
    %23 = vector.extract_strided_slice %3 {offsets = [1, 1, 0], sizes = [7, 7, 4], strides = [1, 1, 1]} : vector<8x8x4xf32> to vector<7x7x4xf32>
    %24 = arith.addf %22, %23 : vector<7x7x4xf32>
    %25 = vector.extract_strided_slice %11 {offsets = [0, 0, 0], sizes = [8, 8, 2], strides = [1, 1, 1]} : vector<8x8x4xf32> to vector<8x8x2xf32>
    %26 = vector.extract_strided_slice %14 {offsets = [0, 0, 0], sizes = [8, 7, 2], strides = [1, 1, 1]} : vector<8x7x4xf32> to vector<8x7x2xf32>
    %27 = vector.extract_strided_slice %17 {offsets = [0, 0, 0], sizes = [7, 8, 2], strides = [1, 1, 1]} : vector<7x8x4xf32> to vector<7x8x2xf32>
    %28 = vector.extract_strided_slice %24 {offsets = [0, 0, 0], sizes = [7, 7, 2], strides = [1, 1, 1]} : vector<7x7x4xf32> to vector<7x7x2xf32>
    %cst = arith.constant 0.000000e+00 : f32
    %29 = vector.broadcast %cst : f32 to vector<1x8x2xf32>
    %cst_3 = arith.constant 0.000000e+00 : f32
    %30 = vector.broadcast %cst_3 : f32 to vector<8x1x2xf32>
    %cst_4 = arith.constant 0.000000e+00 : f32
    %31 = vector.broadcast %cst_4 : f32 to vector<7x1x2xf32>
    %cst_5 = arith.constant 0.000000e+00 : f32
    %32 = vector.broadcast %cst_5 : f32 to vector<1x9x2xf32>
    %33 = tpu.concatenate %30, %26, %30 in 1 : vector<8x1x2xf32>, vector<8x7x2xf32>, vector<8x1x2xf32> -> vector<8x9x2xf32>
    %34 = tpu.concatenate %29, %27, %29 in 0 : vector<1x8x2xf32>, vector<7x8x2xf32>, vector<1x8x2xf32> -> vector<9x8x2xf32>
    %35 = tpu.concatenate %31, %28, %31 in 1 : vector<7x1x2xf32>, vector<7x7x2xf32>, vector<7x1x2xf32> -> vector<7x9x2xf32>
    %36 = tpu.concatenate %32, %35, %32 in 0 : vector<1x9x2xf32>, vector<7x9x2xf32>, vector<1x9x2xf32> -> vector<9x9x2xf32>
    %37 = vector.extract_strided_slice %36 {offsets = [0, 0, 0], sizes = [8, 8, 2], strides = [1, 1, 1]} : vector<9x9x2xf32> to vector<8x8x2xf32>
    %38 = vector.extract_strided_slice %34 {offsets = [0, 0, 0], sizes = [8, 8, 2], strides = [1, 1, 1]} : vector<9x8x2xf32> to vector<8x8x2xf32>
    %39 = vector.extract_strided_slice %36 {offsets = [0, 1, 0], sizes = [8, 8, 2], strides = [1, 1, 1]} : vector<9x9x2xf32> to vector<8x8x2xf32>
    %40 = vector.extract_strided_slice %33 {offsets = [0, 0, 0], sizes = [8, 8, 2], strides = [1, 1, 1]} : vector<8x9x2xf32> to vector<8x8x2xf32>
    %41 = vector.extract_strided_slice %33 {offsets = [0, 1, 0], sizes = [8, 8, 2], strides = [1, 1, 1]} : vector<8x9x2xf32> to vector<8x8x2xf32>
    %42 = vector.extract_strided_slice %36 {offsets = [1, 0, 0], sizes = [8, 8, 2], strides = [1, 1, 1]} : vector<9x9x2xf32> to vector<8x8x2xf32>
    %43 = vector.extract_strided_slice %34 {offsets = [1, 0, 0], sizes = [8, 8, 2], strides = [1, 1, 1]} : vector<9x8x2xf32> to vector<8x8x2xf32>
    %44 = vector.extract_strided_slice %36 {offsets = [1, 1, 0], sizes = [8, 8, 2], strides = [1, 1, 1]} : vector<9x9x2xf32> to vector<8x8x2xf32>
    %45 = tpu.concatenate %37, %38, %39, %40, %25, %41, %42, %43, %44 in 2 : vector<8x8x2xf32>, vector<8x8x2xf32>, vector<8x8x2xf32>, vector<8x8x2xf32>, vector<8x8x2xf32>, vector<8x8x2xf32>, vector<8x8x2xf32>, vector<8x8x2xf32>, vector<8x8x2xf32> -> vector<8x8x18xf32>
    %46 = arith.truncf %45 : vector<8x8x18xf32> to vector<8x8x18xbf16>
    %47 = vector.shape_cast %46 : vector<8x8x18xbf16> to vector<64x18xbf16>
    %c0_6 = arith.constant 0 : index
    %c0_7 = arith.constant 0 : index
    %48 = vector.load %arg2[%c0_6, %c0_7] : memref<18x4xbf16, #tpu.memory_space<vmem>>, vector<18x4xbf16>
    %cst_8 = arith.constant dense<0.000000e+00> : vector<64x4xf32>
    %49 = tpu.matmul %47, %48, %cst_8 {dimension_numbers = #tpu.dot_dimension_numbers<[1], [0], [0], [1], [0, 0, 1, 1], [], []>} : vector<64x18xbf16>, vector<18x4xbf16>, vector<64x4xf32> -> vector<64x4xf32>
    %c0_9 = arith.constant 0 : index
    %c0_10 = arith.constant 0 : index
    %50 = vector.load %arg3[%c0_9, %c0_10] : memref<1x4xf32, #tpu.memory_space<vmem>>, vector<1x4xf32>
    %51 = vector.broadcast %50 : vector<1x4xf32> to vector<64x4xf32>
    %52 = arith.addf %49, %51 : vector<64x4xf32>
    %53 = arith.negf %52 : vector<64x4xf32>
    %54 = math.exp %53 : vector<64x4xf32>
    %cst_11 = arith.constant 1.000000e+00 : f32
    %55 = vector.broadcast %cst_11 : f32 to vector<64x4xf32>
    %56 = arith.addf %55, %54 : vector<64x4xf32>
    %57 = arith.divf %55, %56 : vector<64x4xf32>
    %58 = arith.mulf %52, %57 : vector<64x4xf32>
    %59 = vector.extract_strided_slice %11 {offsets = [0, 0, 2], sizes = [8, 8, 2], strides = [1, 1, 1]} : vector<8x8x4xf32> to vector<8x8x2xf32>
    %60 = vector.extract_strided_slice %14 {offsets = [0, 0, 2], sizes = [8, 7, 2], strides = [1, 1, 1]} : vector<8x7x4xf32> to vector<8x7x2xf32>
    %61 = vector.extract_strided_slice %17 {offsets = [0, 0, 2], sizes = [7, 8, 2], strides = [1, 1, 1]} : vector<7x8x4xf32> to vector<7x8x2xf32>
    %62 = vector.extract_strided_slice %24 {offsets = [0, 0, 2], sizes = [7, 7, 2], strides = [1, 1, 1]} : vector<7x7x4xf32> to vector<7x7x2xf32>
    %cst_12 = arith.constant -1.000000e+30 : f32
    %63 = vector.broadcast %cst_12 : f32 to vector<1x8x2xf32>
    %cst_13 = arith.constant -1.000000e+30 : f32
    %64 = vector.broadcast %cst_13 : f32 to vector<8x1x2xf32>
    %cst_14 = arith.constant -1.000000e+30 : f32
    %65 = vector.broadcast %cst_14 : f32 to vector<7x1x2xf32>
    %cst_15 = arith.constant -1.000000e+30 : f32
    %66 = vector.broadcast %cst_15 : f32 to vector<1x9x2xf32>
    %67 = tpu.concatenate %64, %60, %64 in 1 : vector<8x1x2xf32>, vector<8x7x2xf32>, vector<8x1x2xf32> -> vector<8x9x2xf32>
    %68 = tpu.concatenate %63, %61, %63 in 0 : vector<1x8x2xf32>, vector<7x8x2xf32>, vector<1x8x2xf32> -> vector<9x8x2xf32>
    %69 = tpu.concatenate %65, %62, %65 in 1 : vector<7x1x2xf32>, vector<7x7x2xf32>, vector<7x1x2xf32> -> vector<7x9x2xf32>
    %70 = tpu.concatenate %66, %69, %66 in 0 : vector<1x9x2xf32>, vector<7x9x2xf32>, vector<1x9x2xf32> -> vector<9x9x2xf32>
    %71 = vector.extract_strided_slice %70 {offsets = [0, 0, 0], sizes = [8, 8, 2], strides = [1, 1, 1]} : vector<9x9x2xf32> to vector<8x8x2xf32>
    %72 = vector.extract_strided_slice %68 {offsets = [0, 0, 0], sizes = [8, 8, 2], strides = [1, 1, 1]} : vector<9x8x2xf32> to vector<8x8x2xf32>
    %73 = vector.extract_strided_slice %70 {offsets = [0, 1, 0], sizes = [8, 8, 2], strides = [1, 1, 1]} : vector<9x9x2xf32> to vector<8x8x2xf32>
    %74 = vector.extract_strided_slice %67 {offsets = [0, 0, 0], sizes = [8, 8, 2], strides = [1, 1, 1]} : vector<8x9x2xf32> to vector<8x8x2xf32>
    %75 = vector.extract_strided_slice %67 {offsets = [0, 1, 0], sizes = [8, 8, 2], strides = [1, 1, 1]} : vector<8x9x2xf32> to vector<8x8x2xf32>
    %76 = vector.extract_strided_slice %70 {offsets = [1, 0, 0], sizes = [8, 8, 2], strides = [1, 1, 1]} : vector<9x9x2xf32> to vector<8x8x2xf32>
    %77 = vector.extract_strided_slice %68 {offsets = [1, 0, 0], sizes = [8, 8, 2], strides = [1, 1, 1]} : vector<9x8x2xf32> to vector<8x8x2xf32>
    %78 = vector.extract_strided_slice %70 {offsets = [1, 1, 0], sizes = [8, 8, 2], strides = [1, 1, 1]} : vector<9x9x2xf32> to vector<8x8x2xf32>
    %79 = arith.maximumf %71, %72 : vector<8x8x2xf32>
    %80 = arith.maximumf %79, %73 : vector<8x8x2xf32>
    %81 = arith.maximumf %80, %74 : vector<8x8x2xf32>
    %82 = arith.maximumf %81, %59 : vector<8x8x2xf32>
    %83 = arith.maximumf %82, %75 : vector<8x8x2xf32>
    %84 = arith.maximumf %83, %76 : vector<8x8x2xf32>
    %85 = arith.maximumf %84, %77 : vector<8x8x2xf32>
    %86 = arith.maximumf %85, %78 : vector<8x8x2xf32>
    %87 = arith.truncf %86 : vector<8x8x2xf32> to vector<8x8x2xbf16>
    %88 = vector.shape_cast %87 : vector<8x8x2xbf16> to vector<64x2xbf16>
    %c0_16 = arith.constant 0 : index
    %c0_17 = arith.constant 0 : index
    %89 = vector.load %arg4[%c0_16, %c0_17] : memref<2x4xbf16, #tpu.memory_space<vmem>>, vector<2x4xbf16>
    %cst_18 = arith.constant dense<0.000000e+00> : vector<64x4xf32>
    %90 = tpu.matmul %88, %89, %cst_18 {dimension_numbers = #tpu.dot_dimension_numbers<[1], [0], [0], [1], [0, 0, 1, 1], [], []>} : vector<64x2xbf16>, vector<2x4xbf16>, vector<64x4xf32> -> vector<64x4xf32>
    %c0_19 = arith.constant 0 : index
    %c0_20 = arith.constant 0 : index
    %91 = vector.load %arg5[%c0_19, %c0_20] : memref<1x4xf32, #tpu.memory_space<vmem>>, vector<1x4xf32>
    %92 = vector.broadcast %91 : vector<1x4xf32> to vector<64x4xf32>
    %93 = arith.addf %90, %92 : vector<64x4xf32>
    %94 = arith.negf %93 : vector<64x4xf32>
    %95 = math.exp %94 : vector<64x4xf32>
    %cst_21 = arith.constant 1.000000e+00 : f32
    %96 = vector.broadcast %cst_21 : f32 to vector<64x4xf32>
    %97 = arith.addf %96, %95 : vector<64x4xf32>
    %98 = arith.divf %96, %97 : vector<64x4xf32>
    %99 = arith.mulf %93, %98 : vector<64x4xf32>
    %100 = vector.shape_cast %58 : vector<64x4xf32> to vector<8x8x4xf32>
    %101 = vector.shape_cast %99 : vector<64x4xf32> to vector<8x8x4xf32>
    %102 = tpu.concatenate %100, %101 in 2 : vector<8x8x4xf32>, vector<8x8x4xf32> -> vector<8x8x8xf32>
    %c0_22 = arith.constant 0 : index
    %c0_23 = arith.constant 0 : index
    %c0_24 = arith.constant 0 : index
    %c0_25 = arith.constant 0 : index
    %103 = vector.load %arg6[%c0_22, %c0_23, %c0_24, %c0_25] : memref<1x8x8x8xf32, #tpu.memory_space<vmem>>, vector<1x8x8x8xf32>
    %104 = vector.shape_cast %103 : vector<1x8x8x8xf32> to vector<8x8x8xf32>
    %105 = vector.shape_cast %102 : vector<8x8x8xf32> to vector<1x8x8x8xf32>
    tpu.vector_store %arg6[%c0_22, %c0_23, %c0_24, %c0_25], %105 {strides = array<i32>} : memref<1x8x8x8xf32, #tpu.memory_space<vmem>>, vector<1x8x8x8xf32>,
    return
  }
  func.func @transform_0(%arg0: i32) -> (i32, i32, i32, i32) {
    %c0_i32 = arith.constant 0 : i32
    %c0_i32_0 = arith.constant 0 : i32
    %c0_i32_1 = arith.constant 0 : i32
    %c0_i32_2 = arith.constant 0 : i32
    return %arg0, %c0_i32, %c0_i32_0, %c0_i32_1 : i32, i32, i32, i32
  }
  func.func @transform_1(%arg0: i32) -> (i32, i32) {
    %c0_i32 = arith.constant 0 : i32
    %c0_i32_0 = arith.constant 0 : i32
    %c0_i32_1 = arith.constant 0 : i32
    return %c0_i32, %c0_i32_0 : i32, i32
  }
  func.func @transform_2(%arg0: i32) -> (i32, i32) {
    %c0_i32 = arith.constant 0 : i32
    %c0_i32_0 = arith.constant 0 : i32
    %c0_i32_1 = arith.constant 0 : i32
    return %c0_i32, %c0_i32_0 : i32, i32
  }
  func.func @transform_3(%arg0: i32) -> (i32, i32) {
    %c0_i32 = arith.constant 0 : i32
    %c0_i32_0 = arith.constant 0 : i32
    %c0_i32_1 = arith.constant 0 : i32
    return %c0_i32, %c0_i32_0 : i32, i32
  }
  func.func @transform_4(%arg0: i32) -> (i32, i32) {
    %c0_i32 = arith.constant 0 : i32
    %c0_i32_0 = arith.constant 0 : i32
    %c0_i32_1 = arith.constant 0 : i32
    return %c0_i32, %c0_i32_0 : i32, i32
  }
  func.func @transform_5(%arg0: i32) -> (i32, i32, i32, i32) {
    %c0_i32 = arith.constant 0 : i32
    %c0_i32_0 = arith.constant 0 : i32
    %c0_i32_1 = arith.constant 0 : i32
    %c0_i32_2 = arith.constant 0 : i32
    return %arg0, %c0_i32, %c0_i32_0, %c0_i32_1 : i32, i32, i32, i32
  }
}

</mosaic_0001>

<bundles_post_ra>
// kernel: tpu_custom_call.1
= control target key start
LH: loop header
LB: loop body
LE: loop exit
PB: predicated region body
PF: predicated region fallthrough
CT: control target
= control target key end

     0   :  { %10 = vsyncpa [#allocation3], 0  ;;  %s3694_s0 = inlined_call_operand.hbm [shape: bf16[2,8,8,16], index: 0, kind: input, shape index: {}]   ;;  %s3695_s1 = inlined_call_operand.vmem [shape: bf16[18,4], index: 1, kind: input, shape index: {}]   ;;  %s3696_s2 = inlined_call_operand.vmem [shape: f32[1,4], index: 2, kind: input, shape index: {}]   ;;  %s3697_s3 = inlined_call_operand.vmem [shape: bf16[2,4], index: 3, kind: input, shape index: {}]   ;;  %s3698_s4 = inlined_call_operand.vmem [shape: f32[1,4], index: 4, kind: input, shape index: {}]   ;;  %s3699_s5 = inlined_call_operand.hbm [shape: f32[2,8,8,8], index: 5, kind: output, shape index: {}]  }
   0x1   :  { %12 = vsyncpa [#allocation3 + $0x1], 0 }
   0x2   :  { %13 = vsyncpa [#allocation4], 0 }
   0x3   :  { %15 = vsyncpa [#allocation4 + $0x1], 0  ;;  %s2542_s18 = smov 0   ;;  %s2544_s19 = smov 0  }
   0x4   :  { %s2546_s20 = smov 0   ;;  %s2548_s21 = smov 0  }
   0x5 LB: > { %s2563_s22 = sadd.s32 4294967295, %s2490_s21   ;;  %s1830_s23 = sadd.s32 4294967294, %s2490_s21   ;;  %s2490_s21 = sphi %s2548_s21, %s3723_s21   ;;  %s2486_s20 = sphi %s2546_s20, %s3722_s20   ;;  %s2482_s19 = sphi %s2544_s19, %s3721_s19   ;;  %s2478_s18 = sphi %s2542_s18, %s3720_s18  }
   0x6   : > { %s2567_s24 = sadd.s32 1, %s2490_s21   ;;  %s28_s25 = sadd.s32 1, %s2486_s20 }
   0x7   : > { %s25_s26 = ssub.s32 %s2490_s21, %s2567_s24  ;;  %p35_p0 = scmp.ne.s32.totalorder %s2486_s20, %s2482_s19 }
   0x8   : > { %p26_p1 = scmp.eq.s32.totalorder %s25_s26, 0  ;;  %p36_p2 = scmp.eq.s32.totalorder %s2490_s21, 0 }
   0x9   : > { %p41_p3 = scmp.ne.s32.totalorder %s2482_s19, %s2478_s18  ;;  %p42_p4 = scmp.eq.s32.totalorder %s2563_s22, 0 }
   0xa   : > { %s2579_s27 = scalar_select %p26_p1, %s2486_s20, %s28_s25  }
   0xb   : > { %p2581_p5 = por %p36_p2, %p35_p0  ;;  %p2585_p6 = por %p42_p4, %p41_p3 }
   0xc   : > { %p149_p7 = scmp.eq.s32.totalorder %s2563_s22, 1  ;;  %p155_p8 = scmp.eq.s32.totalorder %s1830_s23, 1 }
   0xd   : > { %p1909_p10 = scmp.lt.s32.totalorder %s2490_s21, 2  ;;  %s187_s7 = sand.u32 1, %s2486_s20  }
   0xe   : > { %p2592_p11 = por %p149_p7, %p35_p0  ;;  %p2596_p12 = por %p155_p8, %p41_p3 }
   0xf   : > { %s1872_s8 = sshll.u32 %s2490_s21, 5  ;;  %s1833_s9 = sshll.u32 %s187_s7, 5 }
  0x10   : > { %s196_s12 = scalar_lea.hbm %s3694_s0, %s1872_s8  ;;  %s191_s14 = scalar_lea.vmem [#allocation2], %s1833_s9 }
  0x11   : > { %s197_s13 = sshll.u32 %s196_s12, 4  ;;  %s199_s15 = sshll.u32 %s191_s14, 4  ;;  %s198_s13 = int_to_ptr.hbm [resolvable:$true] %s197_s13  ;;  %s200_s15 = int_to_ptr.vmem [resolvable:$true] %s199_s15 }
  0x12   : > { %p2607_p13 = pnand %p1909_p10, %p2581_p5  ;;  %p1836_p0 = scmp.ge.s32.totalorder %s2490_s21, 1 }
  0x13   : > { %p207_p1 = scmp.lt.s32.totalorder %s2490_s21, 3  ;;  %s188_s17 = scalar_lea.sflag [#allocation3], %s187_s7 }
  0x14   : > { %s2394_s23 = sshra.s32 %s198_s13, 4  ;;  %p2398_p3 = pneg %p2607_p13  ;;  %s2395_s23 = int_to_ptr.hbm [resolvable:$true] %s2394_s23 }
  0x15   : > { %s2396_s25 = scalar_lea.hbm %s2395_s23, 32  ;;  %s2401_s28 = scalar_lea.hbm %s3694_s0, 64 }
  0x16   : > { %p2397_p2 = scmp.ne.s32.totalorder %s2395_s23, %s2396_s25  ;;  %p2402_p5 = scmp.lt.s32.totalorder %s2395_s23, %s3694_s0 }
  0x17   : > { %p2403_p8 = scmp.lt.s32.totalorder %s2401_s28, %s2396_s25 }
  0x18   : > { %p2399_p4 = pnand %p2398_p3, %p2397_p2 }
  0x19   : > { %p2404_p10 = por %p2403_p8, %p2402_p5 }
  0x1a   : > { %p2400_p7 = pneg %p2399_p4 }
  0x1c   : > { %p2405_p9 = pnand %p2404_p10, %p2400_p7 }
  0x1e   : > { %2408 = shalt.err (!%p2405_p9)
}
  0x1f   : > { %s2492_s7 = smov 64   ;;  %s2493_s11 = smov 4  }
  0x20   : > { %1904 = dma.hbm_to_vmem [thread:$0]  (!%p2607_p13), %s198_s13, 512, %s200_s15, %s188_s17, %s2492_s7, %s2492_s7, %s2493_s11  }
  0x21   : > { %p208_p2 = pnand %p1836_p0, %p207_p1 }
  0x22   : > { %s2628_s12 = sand.u32 (!%p208_p2), 1, %s2482_s19  }
  0x23   : > { %211 = sbr.rel (%p208_p2) target bundleno = 892 (0x37c), region = 40  ;;  %s1837_s14 = sshll.u32 (!%p208_p2), %s2628_s12, 5 }
  0x24   : > { %s214_s23 = scalar_lea.sflag (!%p208_p2), [#allocation3], %s2628_s12  ;;  %s217_s25 = scalar_lea.vmem (!%p208_p2), [#allocation2], %s1837_s14 }
  0x28   : > { %2469 = dma.done.wait (%p2585_p6), %s214_s23, 512  }
  0x29   : > { %2471 = vsyncadd (%p2585_p6), %s214_s23, 4294966784  ;;  %v1876_v0 = vld [vmem:[%s217_s25] sm:$0xff]   ;;  %v1892_v1 = vld [vmem:[%s217_s25 + $0x10] sm:$0xff]   ;;  %s2494_s29 = smov 124   ;;  %s2495_s13 = smov 120   ;;  %vm582_vm0 = vcmask 1040384  }
  0x2a   : > { %v2636_v2 = vunpack.c.l.bf16 %v1876_v0  ;;  %v2638_v3 = vunpack.c.h.bf16 %v1876_v0  ;;  %v2640_v4 = vunpack.c.l.bf16 %v1892_v1  ;;  %v2642_v5 = vunpack.c.h.bf16 %v1892_v1  ;;  %v1891_v6 = vld [vmem:[%s217_s25 + $0x8] sm:$0xff]   ;;  %v1893_v7 = vld [vmem:[%s217_s25 + $0x18] sm:$0xff]   ;;  %s2496_s15 = smov 4   ;;  %s2497_s16 = smov 8  }
  0x2b   : > { %v2650_v10 = vunpack.c.l.bf16 %v1891_v6  ;;  %v2652_v11 = vunpack.c.h.bf16 %v1891_v6  ;;  %v2654_v12 = vunpack.c.l.bf16 %v1893_v7  ;;  %v2656_v13 = vunpack.c.h.bf16 %v1893_v7  ;;  %s2498_s17 = smov 12   ;;  %s2499_s26 = smov 116  }
  0x2c   : > { %v1963_v8 = vpack.i.bf16 %v2638_v3, %v2636_v2  ;;  %v1973_v9 = vpack.i.bf16 %v2642_v5, %v2640_v4  ;;  %v450_v16 = vrot.slane %v2636_v2, 1  ;;  %v451_v17 = vrot.slane %v2638_v3, 1  ;;  %s2500_s8 = smov 114   ;;  %s2501_s28 = smov 126  }
  0x2d   : > { %v1968_v14 = vpack.i.bf16 %v2652_v11, %v2650_v10  ;;  %v1978_v15 = vpack.i.bf16 %v2656_v13, %v2654_v12  ;;  %v454_v18 = vrot.slane %v2640_v4, 1  ;;  %v455_v19 = vrot.slane %v2642_v5, 1  ;;  %s2502_s9 = smov 118   ;;  %s2503_s10 = smov 122  }
  0x2e   : > { %1964 = vrot.lane.b32.xlu0 %v1963_v8, %s2494_s29  ;;  %1974 = vrot.lane.b32.xlu1 %v1973_v9, %s2494_s29  ;;  %v452_v20 = vrot.slane %v2650_v10, 1  ;;  %v2003_v21 = vpack.i.bf16 %v451_v17, %v450_v16  ;;  %v453_v23 = vrot.slane %v2652_v11, 1  ;;  %v456_v25 = vrot.slane %v2654_v12, 1  ;;  %s2505_s7 = smov 14   ;;  %s2506_s11 = smov 2  }
  0x2f   : > { %1984 = vrot.lane.b32.xlu2 %v1963_v8, %s2495_s13  ;;  %v2013_v22 = vpack.i.bf16 %v455_v19, %v454_v18  ;;  %v2023_v26 = vpack.i.bf16 %v2640_v4, %v2652_v11  ;;  %v2018_v27 = vpack.i.bf16 %v2650_v10, %v2638_v3  ;;  %v2028_v28 = vpack.i.bf16 %v2654_v12, %v2642_v5  ;;  %s2507_s14 = smov 6   ;;  %s2509_s23 = smov 16  }
  0x30   : > { %v2008_v24 = vpack.i.bf16 %v453_v23, %v452_v20  ;;  %v2033_v29 = vpack.i.bf16 %v452_v20, %v451_v17  ;;  %v2043_v30 = vpack.i.bf16 %v456_v25, %v455_v19  ;;  %v2038_v31 = vpack.i.bf16 %v454_v18, %v453_v23 }
  0x31   : > { %v513_v32 = vrot.slane %v2656_v13, 1  ;;  %vm686_vm1 = vcmask 1046528   ;;  %vm903_vm2 = vcmask 15360   ;;  %vm912_vm3 = vcmask 31744  }
  0x32   : > { %vm921_vm4 = vcmask 48128   ;;  %vm930_vm5 = vcmask 64512   ;;  %vm939_vm6 = vcmask 80896   ;;  %vm948_vm7 = vcmask 97280  }
  0x33   : > { %vm957_vm8 = vcmask 113664   ;;  %vm966_vm9 = vcmask 130048   ;;  %vm1019_vm10 = vcmask 146432  }
  0x36   : > { %1969 = vrot.lane.b32.xlu0 %v1968_v14, %s2494_s29  ;;  %1979 = vrot.lane.b32.xlu1 %v1978_v15, %s2494_s29 }
  0x37   : > { %1989 = vrot.lane.b32.xlu2 %v1968_v14, %s2495_s13 }
  0x3e   : > { %1999 = vrot.lane.b32.xlu1 %v1978_v15, %s2495_s13  ;;  %1994 = vrot.lane.b32.xlu0 %v1973_v9, %s2495_s13 }
  0x3f   : > { %2009 = vrot.lane.b32.xlu2 %v2008_v24, %s2496_s15 }
  0x46   : > { %2004 = vrot.lane.b32.xlu1 %v2003_v21, %s2496_s15  ;;  %2014 = vrot.lane.b32.xlu0 %v2013_v22, %s2496_s15 }
  0x47   : > { %2019 = vrot.lane.b32.xlu2 %v2018_v27, %s2497_s16 }
  0x4e   : > { %469 = vrot.lane.b32.xlu1 %v456_v25, %s2496_s15  ;;  %2024 = vrot.lane.b32.xlu0 %v2023_v26, %s2497_s16 }
  0x4f   : > { %2044 = vrot.lane.b32.xlu2 %v2043_v30, %s2498_s17 }
  0x56   : > { %2029 = vrot.lane.b32.xlu1 %v2028_v28, %s2497_s16  ;;  %2034 = vrot.lane.b32.xlu0 %v2033_v29, %s2498_s17 }
  0x5e   : > { %2039 = vrot.lane.b32.xlu1 %v2038_v31, %s2498_s17  ;;  %526 = vrot.lane.b32.xlu0 %v513_v32, %s2498_s17 }
  0x89   : > { %v1985_v51 = vpop.permute.xlu2 %1984 }
  0x8a   : > { %v1987_v59 = vunpack.i.h.bf16 %v1985_v51  ;;  %v1986_v60 = vunpack.i.l.bf16 %v1985_v51 }
  0x8c   : > { %v2748_v62 = vadd.f32 %v1987_v59, %v2638_v3  ;;  %v2753_v0 = vadd.f32 %v1986_v60, %v2636_v2 }
  0x8e   : > { %v383_v8 = vrot.slane %v2748_v62, 1  ;;  %v382_v14 = vrot.slane %v2753_v0, 1 }
  0x91   : > { %v1990_v56 = vpop.permute.xlu2 %1989 }
  0x92   : > { %v1992_v1 = vunpack.i.h.bf16 %v1990_v56  ;;  %v1991_v6 = vunpack.i.l.bf16 %v1990_v56 }
  0x94   : > { %v2760_v16 = vadd.f32 %v1992_v1, %v2652_v11  ;;  %v2763_v17 = vadd.f32 %v1991_v6, %v2650_v10 }
  0x96   : > { %v384_v27 = vrot.slane %v2763_v17, 1  ;;  %v385_v29 = vrot.slane %v2760_v16, 1 }
  0x99   : > { %v2010_v61 = vpop.permute.xlu2 %2009 }
  0x9a   : > { %v2012_v21 = vunpack.i.h.bf16 %v2010_v61  ;;  %v2011_v22 = vunpack.i.l.bf16 %v2010_v61 }
  0xa0   : > { %v1965_v33 = vpop.permute.xlu0 %1964  ;;  %v1975_v34 = vpop.permute.xlu1 %1974 }
  0xa1   : > { %v1967_v35 = vunpack.i.h.bf16 %v1965_v33  ;;  %v1966_v36 = vunpack.i.l.bf16 %v1965_v33  ;;  %v1976_v39 = vunpack.i.l.bf16 %v1975_v34  ;;  %v1977_v49 = vunpack.i.h.bf16 %v1975_v34  ;;  %v2757_v15 = vpop.permute.xlu2 %2019 }
  0xa2   : > { %v481_v34 = vadd.f32 %v2012_v21, %v2652_v11 }
  0xa3   : > { %v2694_v37 = vadd.f32 %v1967_v35, %v2638_v3  ;;  %v2697_v38 = vadd.f32 %v1966_v36, %v2636_v2  ;;  %v2704_v42 = vadd.f32 %v1976_v39, %v2640_v4  ;;  %v2725_v54 = vadd.f32 %v1977_v49, %v2642_v5 }
  0xa4   : > { %v480_v35 = vadd.f32 %v2011_v22, %v2650_v10 }
  0xa5   : > { %344 = vrot.lane.b32.xlu0 %v2694_v37, %s2495_s13  ;;  %342 = vrot.lane.b32.xlu2 %v2697_v38, %s2495_s13 }
  0xa8   : > { %v1970_v40 = vpop.permute.xlu0 %1969  ;;  %v1980_v41 = vpop.permute.xlu1 %1979 }
  0xa9   : > { %v1972_v43 = vunpack.i.h.bf16 %v1970_v40  ;;  %v1971_v44 = vunpack.i.l.bf16 %v1970_v40  ;;  %v1982_v47 = vunpack.i.h.bf16 %v1980_v41  ;;  %v1981_v48 = vunpack.i.l.bf16 %v1980_v41 }
  0xab   : > { %v2707_v45 = vadd.f32 %v1972_v43, %v2652_v11  ;;  %v2710_v46 = vadd.f32 %v1971_v44, %v2650_v10  ;;  %v2719_v52 = vadd.f32 %v1982_v47, %v2656_v13  ;;  %v2722_v53 = vadd.f32 %v1981_v48, %v2654_v12  ;;  %v2045_v47 = vpop.permute.xlu2 %2044 }
  0xac   : > { %v2047_v10 = vunpack.i.h.bf16 %v2045_v47  ;;  %v2046_v48 = vunpack.i.l.bf16 %v2045_v47 }
  0xad   : > { %350 = vrot.lane.b32.xlu0 %v2704_v42, %s2495_s13  ;;  %348 = vrot.lane.b32.xlu2 %v2707_v45, %s2495_s13 }
  0xae   : > { %346 = vrot.lane.b32.xlu1 %v2710_v46, %s2495_s13 }
  0xb0   : > { %v2000_v50 = vpop.permute.xlu1 %1999  ;;  %v1995_v57 = vpop.permute.xlu0 %1994 }
  0xb1   : > { %v1996_v7 = vunpack.i.l.bf16 %v1995_v57  ;;  %v2002_v23 = vunpack.i.h.bf16 %v2000_v50  ;;  %v2001_v24 = vunpack.i.l.bf16 %v2000_v50  ;;  %v1997_v26 = vunpack.i.h.bf16 %v1995_v57 }
  0xb3   : > { %v2766_v18 = vadd.f32 %v1996_v7, %v2640_v4  ;;  %v2780_v41 = vadd.f32 %v2002_v23, %v2656_v13  ;;  %v2783_v43 = vadd.f32 %v2001_v24, %v2654_v12  ;;  %v2786_v44 = vadd.f32 %v1997_v26, %v2642_v5 }
  0xb5   : > { %356 = vrot.lane.b32.xlu0 %v2719_v52, %s2495_s13  ;;  %354 = vrot.lane.b32.xlu2 %v2722_v53, %s2495_s13  ;;  %v386_v28 = vrot.slane %v2766_v18, 1  ;;  %v387_v59 = vrot.slane %v2786_v44, 1  ;;  %v389_v60 = vrot.slane %v2780_v41, 1  ;;  %v388_v1 = vrot.slane %v2783_v43, 1 }
  0xb6   : > { %352 = vrot.lane.b32.xlu1 %v2725_v54, %s2495_s13 }
  0xb8   : > { %v2733_v55 = vpop.permute.xlu1 %2004  ;;  %v2015_v63 = vpop.permute.xlu0 %2014 }
  0xb9   : > { %v2017_v19 = vunpack.i.h.bf16 %v2015_v63  ;;  %v2016_v20 = vunpack.i.l.bf16 %v2015_v63  ;;  %v2007_v57 = vunpack.i.h.bf16 %v2733_v55 }
  0xbb   : > { %v483_v30 = vadd.f32 %v2017_v19, %v2642_v5  ;;  %v482_v31 = vadd.f32 %v2016_v20, %v2640_v4  ;;  %v2006_v5 = vunpack.i.l.bf16 %v2733_v55  ;;  %v2021_v19 = vunpack.i.l.bf16 %v2757_v15 }
  0xbd   : > { %422 = vrot.lane.b32.xlu0 %v2694_v37, %s2497_s16  ;;  %426 = vrot.lane.b32.xlu2 %v2707_v45, %s2497_s16 }
  0xbe   : > { %424 = vrot.lane.b32.xlu1 %v2710_v46, %s2497_s16 }
  0xc0   : > { %v2741_v58 = vpop.permute.xlu1 %469  ;;  %v2025_v25 = vpop.permute.xlu0 %2024 }
  0xc1   : > { %v2027_v36 = vunpack.i.h.bf16 %v2025_v25  ;;  %v2026_v39 = vunpack.i.l.bf16 %v2025_v25 }
  0xc3   : > { %v509_v49 = vadd.f32 %v2027_v36, %v481_v34  ;;  %v508_v50 = vadd.f32 %v2026_v39, %v480_v35 }
  0xc5   : > { %428 = vrot.lane.b32.xlu0 %v2704_v42, %s2497_s16  ;;  %432 = vrot.lane.b32.xlu2 %v2722_v53, %s2497_s16 }
  0xc6   : > { %430 = vrot.lane.b32.xlu1 %v2725_v54, %s2497_s16 }
  0xc8   : > { %v2030_v9 = vpop.permute.xlu1 %2029 }
  0xc9   : > { %v2032_v32 = vunpack.i.h.bf16 %v2030_v9  ;;  %v2031_v33 = vunpack.i.l.bf16 %v2030_v9  ;;  %v478_v9 = vadd.f32 %v2006_v5, %v2636_v2 }
  0xcb   : > { %v511_v4 = vadd.f32 %v2032_v32, %v483_v30  ;;  %v510_v11 = vadd.f32 %v2031_v33, %v482_v31  ;;  %v506_v23 = vadd.f32 %v2021_v19, %v478_v9 }
  0xcd   : > { %434 = vrot.lane.b32.xlu0 %v2719_v52, %s2497_s16  ;;  %392 = vrot.lane.b32.xlu2 %v383_v8, %s2496_s15  ;;  %v539_v61 = vadd.f32 %v2046_v48, %v510_v11  ;;  %v2795_v63 = vadd.f32 %v2047_v10, %v511_v4  ;;  %v479_v8 = vadd.f32 %v2007_v57, %v2638_v3  ;;  %v2035_v3 = vpop.permute.xlu0 %2034 }
  0xce   : > { %390 = vrot.lane.b32.xlu1 %v382_v14, %s2496_s15  ;;  %v2022_v14 = vunpack.i.h.bf16 %v2757_v15  ;;  %v2037_v25 = vunpack.i.h.bf16 %v2035_v3  ;;  %v2036_v2 = vunpack.i.l.bf16 %v2035_v3 }
  0xcf   : > { %v623_v55 = vrot.slane %v539_v61, 7  ;;  %v624_v20 = vrot.slane %v2795_v63, 7 }
  0xd0   : > { %v2040_v40 = vpop.permute.xlu1 %2039  ;;  %v507_v24 = vadd.f32 %v2022_v14, %v479_v8 }
  0xd1   : > { %v2042_v51 = vunpack.i.h.bf16 %v2040_v40  ;;  %v2041_v56 = vunpack.i.l.bf16 %v2040_v40  ;;  %v2058_v26 = vpack.i.bf16 %v624_v20, %v623_v55 }
  0xd3   : > { %v538_v6 = vadd.f32 %v2042_v51, %v509_v49  ;;  %v537_v7 = vadd.f32 %v2041_v56, %v508_v50 }
  0xd5   : > { %394 = vrot.lane.b32.xlu0 %v384_v27, %s2496_s15  ;;  %398 = vrot.lane.b32.xlu2 %v386_v28, %s2496_s15  ;;  %v622_v21 = vrot.slane %v538_v6, 7  ;;  %v621_v22 = vrot.slane %v537_v7, 7  ;;  %v2808_v27 = vadd.f32 %v2036_v2, %v506_v23  ;;  %v536_v28 = vadd.f32 %v2037_v25, %v507_v24  ;;  %v2817_v35 = vpop.permute.xlu0 %526 }
  0xd6   : > { %396 = vrot.lane.b32.xlu1 %v385_v29, %s2496_s15 }
  0xd7   : > { %v2053_v15 = vpack.i.bf16 %v622_v21, %v621_v22  ;;  %v2073_v29 = vpack.i.bf16 %v623_v55, %v622_v21  ;;  %v619_v30 = vrot.slane %v2808_v27, 7  ;;  %v620_v31 = vrot.slane %v536_v28, 7 }
  0xd9   : > { %v2048_v32 = vpack.i.bf16 %v620_v31, %v619_v30  ;;  %v2068_v33 = vpack.i.bf16 %v621_v22, %v620_v31 }
  0xdd   : > { %400 = vrot.lane.b32.xlu0 %v387_v59, %s2496_s15  ;;  %404 = vrot.lane.b32.xlu2 %v389_v60, %s2496_s15 }
  0xde   : > { %402 = vrot.lane.b32.xlu1 %v388_v1, %s2496_s15 }
  0xe5   : > { %2059 = vrot.lane.b32.xlu2 %v2058_v26, %s2499_s26  ;;  %2049 = vrot.lane.b32.xlu0 %v2048_v32, %s2499_s26 }
  0xe6   : > { %2054 = vrot.lane.b32.xlu1 %v2053_v15, %s2499_s26 }
  0xee   : > { %2069 = vrot.lane.b32.xlu1 %v2068_v33, %s2500_s8 }
  0xff   : > { %v343_v34 = vpop.permute.xlu2 %342 }
 0x100   : > { %v2820_v40 = vadd.f32 %v343_v34, %v2697_v38 }
 0x107   : > { %v349_v36 = vpop.permute.xlu2 %348 }
 0x10f   : > { %v355_v11 = vpop.permute.xlu2 %354 }
 0x117   : > { %v345_v39 = vpop.permute.xlu0 %344  ;;  %v427_v56 = vpop.permute.xlu2 %426 }
 0x118   : > { %v2823_v47 = vadd.f32 %v345_v39, %v2694_v37 }
 0x11a   : > { %v2128_v4 = vpack.i.bf16 %v2823_v47, %v2820_v40 }
 0x11f   : > { %v351_v10 = vpop.permute.xlu0 %350  ;;  %v433_v7 = vpop.permute.xlu2 %432 }
 0x120   : > { %v370_v48 = vadd.f32 %v351_v10, %v2704_v42  ;;  %v347_v49 = vpop.permute.xlu1 %346  ;;  %v448_v55 = vadd.f32 %v433_v7, %v2725_v54 }
 0x121   : > { %v2831_v57 = vadd.f32 %v347_v49, %v2710_v46 }
 0x122   : > { %v2063_v50 = vpack.i.bf16 %v370_v48, %v2656_v13 }
 0x124   : > { %2064 = vrot.lane.b32.xlu2 %v2063_v50, %s2497_s16 }
 0x127   : > { %v357_v51 = vpop.permute.xlu0 %356  ;;  %v393_v23 = vpop.permute.xlu2 %392 }
 0x128   : > { %v2834_v5 = vadd.f32 %v357_v51, %v2719_v52  ;;  %v353_v59 = vpop.permute.xlu1 %352  ;;  %v2843_v52 = vadd.f32 %v427_v56, %v2710_v46  ;;  %v415_v46 = vadd.f32 %v393_v23, %v2748_v62 }
 0x129   : > { %v371_v39 = vadd.f32 %v353_v59, %v2725_v54 }
 0x12a   : > { %v2168_v60 = vpack.i.bf16 %v2831_v57, %v2834_v5  ;;  %v551_v15 = vrot.slane %v415_v46, 7 }
 0x12b   : > { %v2113_v49 = vpack.i.bf16 %v371_v39, %v370_v48  ;;  %v2133_v54 = vpack.i.bf16 %v2820_v40, %v371_v39 }
 0x12c   : > { %2074 = vrot.lane.b32.xlu2 %v2073_v29, %s2500_s8 }
 0x12f   : > { %v423_v61 = vpop.permute.xlu0 %422  ;;  %v399_v50 = vpop.permute.xlu2 %398 }
 0x130   : > { %v443_v1 = vadd.f32 %v423_v61, %v2697_v38  ;;  %v425_v13 = vpop.permute.xlu1 %424 }
 0x131   : > { %v444_v6 = vadd.f32 %v425_v13, %v2694_v37 }
 0x133   : > { %v2083_v8 = vpack.i.bf16 %v444_v6, %v443_v1  ;;  %v2098_v31 = vpack.i.bf16 %v2843_v52, %v444_v6 }
 0x135   : > { %2084 = vrot.lane.b32.xlu2 %v2083_v8, %s2495_s13 }
 0x137   : > { %v429_v9 = vpop.permute.xlu0 %428  ;;  %v405_v56 = vpop.permute.xlu2 %404 }
 0x138   : > { %v2846_v14 = vadd.f32 %v429_v9, %v2707_v45  ;;  %v431_v19 = vpop.permute.xlu1 %430 }
 0x139   : > { %v2850_v21 = vadd.f32 %v431_v19, %v2704_v42  ;;  %v2861_v42 = vadd.f32 %v349_v36, %v2707_v45 }
 0x13a   : > { %v2088_v37 = vpack.i.bf16 %v2846_v14, %v2843_v52 }
 0x13b   : > { %v2108_v38 = vpack.i.bf16 %v2850_v21, %v2846_v14  ;;  %v2093_v22 = vpack.i.bf16 %v448_v55, %v2850_v21  ;;  %v2103_v26 = vpack.i.bf16 %v2861_v42, %v2831_v57 }
 0x13d   : > { %2094 = vrot.lane.b32.xlu1 %v2093_v22, %s2495_s13 }
 0x13f   : > { %v435_v24 = vpop.permute.xlu0 %434 }
 0x140   : > { %v449_v3 = vadd.f32 %v435_v24, %v2722_v53  ;;  %v391_v25 = vpop.permute.xlu1 %390 }
 0x141   : > { %v414_v2 = vadd.f32 %v391_v25, %v2753_v0 }
 0x142   : > { %610 = vrot.lane.b32.xlu2 %v449_v3, %s2495_s13  ;;  %v2118_v34 = vpack.i.bf16 %v449_v3, %v448_v55 }
 0x143   : > { %v550_v28 = vrot.slane %v414_v2, 7 }
 0x145   : > { %v2867_v29 = vpack.i.bf16 %v551_v15, %v550_v28  ;;  %2104 = vrot.lane.b32.xlu1 %v2103_v26, %s2501_s28 }
 0x147   : > { %v395_v62 = vpop.permute.xlu0 %394 }
 0x148   : > { %v416_v32 = vadd.f32 %v395_v62, %v2763_v17  ;;  %v397_v45 = vpop.permute.xlu1 %396  ;;  %v372_v17 = vadd.f32 %v355_v11, %v2722_v53  ;;  %v421_v11 = vadd.f32 %v405_v56, %v2780_v41  ;;  %v2060_v41 = vpop.permute.xlu2 %2059 }
 0x149   : > { %v417_v33 = vadd.f32 %v397_v45, %v2760_v16  ;;  %v2062_v7 = vunpack.i.h.bf16 %v2060_v41  ;;  %v2061_v8 = vunpack.i.l.bf16 %v2060_v41 }
 0x14a   : > { %v552_v0 = vrot.slane %v416_v32, 7  ;;  %2099 = vrot.lane.b32.xlu2 %v2098_v31, %s2502_s9  ;;  %v2123_v16 = vpack.i.bf16 %v2834_v5, %v372_v17  ;;  %v2138_v51 = vpack.i.bf16 %v372_v17, %v2823_v47  ;;  %v557_v40 = vrot.slane %v421_v11, 7 }
 0x14b   : > { %v553_v36 = vrot.slane %v417_v33, 7  ;;  %v2904_v22 = vsel %vm582_vm0, 0.0, %v2062_v7  ;;  %v2907_v23 = vsel %vm582_vm0, 0.0, %v2061_v8 }
 0x14c   : > { %v2188_v3 = vpack.i.bf16 %v2904_v22, %v2907_v23 }
 0x14d   : > { %v2874_v10 = vpack.i.bf16 %v553_v36, %v552_v0  ;;  %2119 = vrot.lane.b32.xlu1 %v2118_v34, %s2502_s9 }
 0x150   : > { %v403_v48 = vpop.permute.xlu1 %402 }
 0x151   : > { %v420_v53 = vadd.f32 %v403_v48, %v2783_v43 }
 0x152   : > { %2114 = vrot.lane.b32.xlu2 %v2113_v49, %s2501_s28 }
 0x153   : > { %v556_v59 = vrot.slane %v420_v53, 7 }
 0x155   : > { %1256 = vrot.lane.b32.xlu1 %v443_v1, %s2502_s9  ;;  %v2178_v61 = vpack.i.bf16 %v557_v40, %v556_v59  ;;  %v418_v1 = vadd.f32 %v399_v50, %v2766_v18 }
 0x157   : > { %v554_v13 = vrot.slane %v418_v1, 7 }
 0x158   : > { %v2934_v62 = vpop.permute.xlu1 %2054 }
 0x159   : > { %v2057_v21 = vunpack.i.h.bf16 %v2934_v62 }
 0x15a   : > { %2124 = vrot.lane.b32.xlu2 %v2123_v16, %s2501_s28 }
 0x15b   : > { %v2971_v32 = vsel %vm582_vm0, 0.0, %v2057_v21 }
 0x15c   : > { %v695_v5 = vrot.slane %v2971_v32, 1 }
 0x15d   : > { %2129 = vrot.lane.b32.xlu1 %v2128_v4, %s2501_s28  ;;  %v401_v4 = vpop.permute.xlu0 %400 }
 0x15e   : > { %v419_v47 = vadd.f32 %v401_v4, %v2786_v44  ;;  %v484_v44 = vadd.f32 %v2654_v12, %v2741_v58  ;;  %v2504_v58 = vmov 0.0   ;;  %v699_v4 = vrot.slane %v2904_v22, 1 }
 0x15f   : > { %v2918_v26 = vrot.slane %v2504_v58, 1 }
 0x160   : > { %v555_v43 = vrot.slane %v419_v47, 7  ;;  %v2940_v31 = vpop.permute.xlu1 %2069 }
 0x162   : > { %2134 = vrot.lane.b32.xlu2 %v2133_v54, %s2497_s16  ;;  %v2173_v6 = vpack.i.bf16 %v555_v43, %v554_v13  ;;  %v700_v43 = vsel %vm686_vm1, %v699_v4, %v2918_v26 }
 0x165   : > { %2139 = vrot.lane.b32.xlu1 %v2138_v51, %s2497_s16  ;;  %v2050_v9 = vpop.permute.xlu0 %2049 }
 0x166   : > { %v2051_v19 = vunpack.i.l.bf16 %v2050_v9 }
 0x168   : > { %v2910_v46 = vsel %vm582_vm0, 0.0, %v2051_v19 }
 0x169   : > { %v689_v2 = vrot.slane %v2910_v46, 1 }
 0x16a   : > { %2149 = vrot.lane.b32.xlu2 %v2874_v10, %s2494_s29 }
 0x16b   : > { %v2923_v15 = vsel %vm686_vm1, %v689_v2, %v2918_v26 }
 0x16c   : > { %v2208_v28 = vpack.i.bf16 %v2923_v15, %v2918_v26 }
 0x16d   : > { %2144 = vrot.lane.b32.xlu1 %v2867_v29, %s2494_s29 }
 0x172   : > { %2179 = vrot.lane.b32.xlu2 %v2178_v61, %s2503_s10 }
 0x175   : > { %2159 = vrot.lane.b32.xlu1 %v2178_v61, %s2494_s29 }
 0x17d   : > { %2174 = vrot.lane.b32.xlu1 %v2173_v6, %s2503_s10 }
 0x17e   : > { %v2898_v55 = vpop.permute.xlu2 %2064 }
 0x17f   : > { %v2066_v18 = vunpack.i.l.bf16 %v2898_v55 }
 0x181   : > { %v512_v24 = vadd.f32 %v2066_v18, %v484_v44 }
 0x183   : > { %v541_v25 = vadd.f32 %v2817_v35, %v512_v24 }
 0x185   : > { %2189 = vrot.lane.b32.xlu1 %v2188_v3, %s2498_s17  ;;  %v625_v12 = vrot.slane %v541_v25, 7 }
 0x187   : > { %638 = vrot.lane.b32.xlu0 %v625_v12, %s2499_s26  ;;  %v2078_v35 = vpack.i.bf16 %v625_v12, %v624_v20  ;;  %v2949_v20 = vpop.permute.xlu2 %2074  ;;  %s1742_s26 = scalar_lea.sflag [#allocation4], %s2628_s12 }
 0x18d   : > { %2209 = vrot.lane.b32.xlu1 %v2208_v28, %s2496_s15 }
 0x18f   : > { %2079 = vrot.lane.b32.xlu0 %v2078_v35, %s2500_s8  ;;  %v2508_v35 = vmov -1e+30  }
 0x190   : > { %v3038_v21 = vrot.slane %v2508_v35, 1 }
 0x197   : > { %1277 = vrot.lane.b32.xlu0 %v619_v30, %s2500_s8  ;;  %v2955_v30 = vpop.permute.xlu2 %2084 }
 0x19f   : > { %2089 = vrot.lane.b32.xlu0 %v2088_v37, %s2495_s13  ;;  %v2963_v14 = vpop.permute.xlu2 %610  ;;  %s2510_s13 = smov 10  }
 0x1a7   : > { %2109 = vrot.lane.b32.xlu0 %v2108_v38, %s2502_s9  ;;  %v2052_v38 = vunpack.i.h.bf16 %v2050_v9  ;;  %v2976_v33 = vpop.permute.xlu2 %2099  ;;  %v2086_v9 = vunpack.i.l.bf16 %v2955_v30 }
 0x1a9   : > { %v2974_v45 = vsel %vm582_vm0, 0.0, %v2052_v38 }
 0x1aa   : > { %v2193_v57 = vpack.i.bf16 %v2974_v45, %v2910_v46  ;;  %v691_v28 = vrot.slane %v2974_v45, 1 }
 0x1af   : > { %v2946_v63 = vpop.permute.xlu1 %2094  ;;  %2154 = vrot.lane.b32.xlu0 %v2173_v6, %s2494_s29  ;;  %v2992_v39 = vpop.permute.xlu2 %2114 }
 0x1b0   : > { %v2096_v49 = vunpack.i.l.bf16 %v2946_v63 }
 0x1b7   : > { %v2951_v27 = vpop.permute.xlu1 %2104  ;;  %2164 = vrot.lane.b32.xlu0 %v2874_v10, %s2503_s10  ;;  %v2097_v10 = vunpack.i.h.bf16 %v2946_v63  ;;  %v3001_v16 = vpop.permute.xlu2 %2124 }
 0x1b9   : > { %v2248_v54 = vpack.i.bf16 %v2963_v14, %v2097_v10 }
 0x1bf   : > { %v2957_v52 = vpop.permute.xlu1 %2119  ;;  %2169 = vrot.lane.b32.xlu0 %v2168_v60, %s2497_s16  ;;  %v697_v60 = vrot.slane %v2907_v23, 1  ;;  %v3011_v11 = vpop.permute.xlu2 %2134 }
 0x1c0   : > { %v2122_v25 = vunpack.i.h.bf16 %v2957_v52  ;;  %v3701_v2 = vunpack.i.l.bf16 %v2957_v52 }
 0x1c1   : > { %v698_v34 = vsel %vm686_vm1, %v697_v60, %v2918_v26 }
 0x1c2   : > { %v2213_v12 = vpack.i.bf16 %v700_v43, %v698_v34 }
 0x1c7   : > { %v2966_v37 = vpop.permute.xlu1 %1256  ;;  %2184 = vrot.lane.b32.xlu0 %v2867_v29, %s2503_s10  ;;  %v2987_v29 = vsel %vm686_vm1, %v695_v5, %v2918_v26  ;;  %v3016_v40 = vpop.permute.xlu2 %2149 }
 0x1c8   : > { %v2203_v36 = vpack.i.bf16 %v698_v34, %v2987_v29 }
 0x1cf   : > { %v2982_v0 = vpop.permute.xlu1 %2129  ;;  %2194 = vrot.lane.b32.xlu0 %v2193_v57, %s2498_s17  ;;  %v2180_v7 = vpop.permute.xlu2 %2179 }
 0x1d0   : > { %v2182_v44 = vunpack.i.h.bf16 %v2180_v7  ;;  %v2181_v18 = vunpack.i.l.bf16 %v2180_v7 }
 0x1d2   : > { %v1255_v34 = vsel %vm582_vm0, -1e+30, %v2182_v44 }
 0x1d3   : > { %v1414_v4 = vrot.slane %v1255_v34, 1 }
 0x1d7   : > { %2204 = vrot.lane.b32.xlu0 %v2203_v36, %s2496_s15  ;;  %v2997_v17 = vpop.permute.xlu1 %2139 }
 0x1df   : > { %2239 = vrot.lane.b32.xlu0 %v2946_v63, %s2505_s7  ;;  %v2145_v50 = vpop.permute.xlu1 %2144 }
 0x1e0   : > { %v2147_v51 = vunpack.i.h.bf16 %v2145_v50  ;;  %v2146_v48 = vunpack.i.l.bf16 %v2145_v50  ;;  %v1254_v50 = vsel %vm582_vm0, -1e+30, %v2181_v18 }
 0x1e2   : > { %v3006_v56 = vsel %vm582_vm0, 0.0, %v2147_v51  ;;  %v3009_v53 = vsel %vm582_vm0, 0.0, %v2146_v48 }
 0x1e3   : > { %v2258_v59 = vpack.i.bf16 %v3006_v56, %v3009_v53 }
 0x1e7   : > { %2249 = vrot.lane.b32.xlu0 %v2248_v54, %s2506_s11  ;;  %v3068_v7 = vpop.permute.xlu1 %2159 }
 0x1ef   : > { %2259 = vrot.lane.b32.xlu0 %v2258_v59, %s2507_s14 }
 0x1f9   : > { %v639_v61 = vpop.permute.xlu0 %638 }
 0x1fa   : > { %v3020_v47 = vsel %vm582_vm0, 0.0, %v639_v61  ;;  %v1412_v61 = vrot.slane %v1254_v50, 1 }
 0x1fb   : > { %v2198_v1 = vpack.i.bf16 0.0, %v3020_v47  ;;  %v701_v41 = vrot.slane %v3020_v47, 1 }
 0x1fd   : > { %2199 = vrot.lane.b32.xlu2 %v2198_v1, %s2498_s17  ;;  %v3029_v13 = vsel %vm686_vm1, %v701_v41, %v2918_v26  ;;  %v3064_v41 = vsel %vm686_vm1, %v691_v28, %v2918_v26  ;;  %v1413_v28 = vsel %vm686_vm1, %v1412_v61, %v3038_v21 }
 0x1fe   : > { %v2223_v6 = vpack.i.bf16 %v3029_v13, %v700_v43  ;;  %v2127_v43 = vunpack.i.h.bf16 %v3001_v16  ;;  %v2218_v18 = vpack.i.bf16 %v3064_v41, %v2923_v15  ;;  %v2076_v15 = vunpack.i.l.bf16 %v2949_v20 }
 0x200   : > { %2224 = vrot.lane.b32.xlu1 %v2223_v6, %s2496_s15  ;;  %v2126_v6 = vunpack.i.l.bf16 %v3001_v16 }
 0x201   : > { %v2080_v19 = vpop.permute.xlu0 %2079 }
 0x202   : > { %v2082_v24 = vunpack.i.h.bf16 %v2080_v19  ;;  %v2081_v3 = vunpack.i.l.bf16 %v2080_v19 }
 0x204   : > { %v1304_v38 = vsel %vm582_vm0, -1e+30, %v2082_v24  ;;  %v3042_v57 = vsel %vm582_vm0, -1e+30, %v2081_v3 }
 0x205   : > { %v1311_v5 = vmax.f32 %v1304_v38, %v2122_v25  ;;  %v1334_v60 = vrot.slane %v1304_v38, 1  ;;  %v1310_v36 = vmax.f32 %v3042_v57, %v3701_v2  ;;  %v1332_v10 = vrot.slane %v3042_v57, 1  ;;  %2214 = vrot.lane.b32.xlu2 %v2213_v12, %s2509_s23 }
 0x206   : > { %v1415_v12 = vsel %vm686_vm1, %v1414_v4, %v3038_v21 }
 0x207   : > { %v1335_v54 = vsel %vm686_vm1, %v1334_v60, %v3038_v21  ;;  %v3055_v51 = vsel %vm686_vm1, %v1332_v10, %v3038_v21 }
 0x208   : > { %v1351_v48 = vmax.f32 %v1311_v5, %v1335_v54  ;;  %v1350_v59 = vmax.f32 %v1310_v36, %v3055_v51  ;;  %2244 = vrot.lane.b32.xlu1 %v2955_v30, %s2505_s7  ;;  %v2077_v36 = vunpack.i.h.bf16 %v2949_v20 }
 0x209   : > { %v3060_v1 = vpop.permute.xlu0 %1277 }
 0x20a   : > { %v1359_v19 = vmax.f32 %v1351_v48, %v1255_v34  ;;  %v1358_v44 = vmax.f32 %v1350_v59, %v1254_v50  ;;  %v2175_v59 = vpop.permute.xlu1 %2174 }
 0x20b   : > { %v2176_v63 = vunpack.i.l.bf16 %v2175_v59 }
 0x20c   : > { %v1390_v24 = vmax.f32 %v1358_v44, %v2126_v6  ;;  %v1391_v3 = vmax.f32 %v1359_v19, %v2127_v43  ;;  %v3087_v6 = vsel %vm582_vm0, -1e+30, %v2077_v36  ;;  %v3090_v19 = vsel %vm582_vm0, -1e+30, %v2076_v15  ;;  %v1464_v15 = vld [vmem:[%s3697_s3] sm:$0x1] }
 0x20d   : > { %2219 = vrot.lane.b32.xlu2 %v2218_v18, %s2509_s23  ;;  %v2056_v18 = vunpack.i.l.bf16 %v2934_v62  ;;  %v2233_v62 = vpack.i.bf16 %v2086_v9, %v2504_v58 }
 0x20e   : > { %v1430_v35 = vmax.f32 %v1390_v24, %v1413_v28  ;;  %v1431_v5 = vmax.f32 %v1391_v3, %v1415_v12  ;;  %v1330_v24 = vrot.slane %v3087_v6, 1  ;;  %v1328_v3 = vrot.slane %v3090_v19, 1 }
 0x210   : > { %v1438_v16 = vmax.f32 %v1430_v35, %v1304_v38  ;;  %v1439_v60 = vmax.f32 %v1431_v5, -1e+30  ;;  %v2072_v38 = vunpack.i.h.bf16 %v2940_v31 }
 0x211   : > { %v3078_v10 = vpop.permute.xlu0 %2089 }
 0x212   : > { %v1446_v34 = vmax.f32 %v1438_v16, %v2122_v25  ;;  %v2092_v50 = vunpack.i.h.bf16 %v3078_v10  ;;  %v1447_v48 = vmax.f32 %v1439_v60, -1e+30  ;;  %v2177_v25 = vunpack.i.h.bf16 %v2175_v59 }
 0x213   : > { %v3104_v35 = vsel %vm582_vm0, -1e+30, %v2072_v38  ;;  %v2161_v60 = vunpack.i.l.bf16 %v3068_v7  ;;  %v3702_v59 = vunpack.i.l.bf16 %v2976_v33 }
 0x214   : > { %v2228_v4 = vpack.i.bf16 %v2096_v49, %v2092_v50  ;;  %v1454_v61 = vmax.f32 %v1446_v34, %v1335_v54  ;;  %v1455_v43 = vmax.f32 %v1447_v48, %v3038_v21  ;;  %v2071_v54 = vunpack.i.l.bf16 %v2940_v31 }
 0x215   : > { %v2162_v31 = vunpack.i.h.bf16 %v3068_v7  ;;  %v1253_v36 = vsel %vm582_vm0, -1e+30, %v2177_v25  ;;  %v1252_v50 = vsel %vm582_vm0, -1e+30, %v2176_v63  ;;  %v1502_v48 = vsel %vm582_vm0, %v1464_v15, 0 }
 0x216   : > { %2229 = vrot.lane.b32.xlu2 %v2228_v4, %s2506_s11  ;;  %v1462_v20 = vpack.c.bf16 %v1454_v61, %v1454_v61  ;;  %v1463_v44 = vpack.c.bf16 %v1455_v43, %v1455_v43  ;;  %v3126_v7 = vsel %vm582_vm0, 0.0, %v2056_v18  ;;  %v3131_v4 = vsel %vm686_vm1, %v1328_v3, %v3038_v21  ;;  %1896 = vmatpush.bf16.msra.mxu3 %v1502_v48 }
 0x217   : > { %v1331_v61 = vsel %vm686_vm1, %v1330_v24, %v3038_v21  ;;  %1511 = vmatpush.bf16.msra.mxu1 %v1502_v48  ;;  %v1326_v43 = vrot.slane %v3104_v35, 1  ;;  %v3137_v38 = vsel %vm582_vm0, -1e+30, %v2071_v54  ;;  %v2116_v18 = vunpack.i.l.bf16 %v2992_v39 }
 0x218   : > { %v3094_v49 = vunpack.c.l.b16 %v1462_v20  ;;  %v3101_v28 = vunpack.c.l.b16 %v1463_v44  ;;  %v2117_v44 = vunpack.i.h.bf16 %v2992_v39  ;;  %v1410_v63 = vrot.slane %v1253_v36, 1 }
 0x219   : > { %v3099_v12 = vpop.permute.xlu0 %2109  ;;  %v1408_v3 = vrot.slane %v1252_v50, 1  ;;  %v3144_v24 = vsel %vm582_vm0, 0.0, %v2162_v31  ;;  %v3147_v15 = vsel %vm582_vm0, 0.0, %v2161_v60  ;;  %v793_v39 = vrot.slane %v3006_v56, 1 }
 0x21a   : > { %v2112_v5 = vunpack.i.h.bf16 %v3099_v12  ;;  %v3700_v16 = vunpack.i.l.bf16 %v3099_v12  ;;  %v791_v60 = vrot.slane %v3009_v53, 1 }
 0x21c   : > { %v1309_v58 = vmax.f32 %v3087_v6, %v2112_v5  ;;  %v1308_v9 = vmax.f32 %v3090_v19, %v3700_v16 }
 0x21e   : > { %v1349_v20 = vmax.f32 %v1309_v58, %v1331_v61  ;;  %v1348_v25 = vmax.f32 %v1308_v9, %v3131_v4  ;;  %2234 = vrot.lane.b32.xlu2 %v2233_v62, %s2506_s11  ;;  %v1324_v58 = vrot.slane %v3137_v38, 1  ;;  %v2102_v9 = vunpack.i.h.bf16 %v2976_v33 }
 0x21f   : > { %v1306_v62 = vmax.f32 %v3137_v38, %v3702_v59 }
 0x220   : > { %v1357_v48 = vmax.f32 %v1349_v20, %v1253_v36  ;;  %v1356_v54 = vmax.f32 %v1348_v25, %v1252_v50  ;;  %v1411_v36 = vsel %vm686_vm1, %v1410_v63, %v3038_v21  ;;  %v1409_v50 = vsel %vm686_vm1, %v1408_v3, %v3038_v21 }
 0x221   : > { %v2155_v34 = vpop.permute.xlu0 %2154  ;;  %v2263_v20 = vpack.i.bf16 %v3144_v24, %v3147_v15  ;;  %v693_v63 = vrot.slane %v3126_v7, 1  ;;  %v3170_v3 = vsel %vm686_vm1, %v1324_v58, %v3038_v21  ;;  %v792_v58 = vsel %vm686_vm1, %v791_v60, %v2918_v26 }
 0x222   : > { %v1389_v16 = vmax.f32 %v1357_v48, %v2117_v44  ;;  %v1388_v8 = vmax.f32 %v1356_v54, %v2116_v18  ;;  %v2157_v31 = vunpack.i.h.bf16 %v2155_v34  ;;  %v2156_v2 = vunpack.i.l.bf16 %v2155_v34 }
 0x223   : > { %v1307_v34 = vmax.f32 %v3104_v35, %v2102_v9 }
 0x224   : > { %v1429_v25 = vmax.f32 %v1389_v16, %v1411_v36  ;;  %v1428_v59 = vmax.f32 %v1388_v8, %v1409_v50  ;;  %v588_v56 = vsel %vm582_vm0, 0.0, %v2157_v31  ;;  %v587_v44 = vsel %vm582_vm0, 0.0, %v2156_v2 }
 0x225   : > { %v801_v53 = vrot.slane %v588_v56, 1  ;;  %v799_v18 = vrot.slane %v587_v44, 1  ;;  %v2253_v48 = vpack.i.bf16 %v588_v56, %v587_v44  ;;  %v3177_v2 = vsel %vm686_vm1, %v1326_v43, %v3038_v21 }
 0x226   : > { %v1436_v16 = vmax.f32 %v1428_v59, %v3087_v6  ;;  %2264 = vrot.lane.b32.xlu2 %v2263_v20, %s2507_s14  ;;  %v1437_v8 = vmax.f32 %v1429_v25, %v3042_v57  ;;  %v794_v57 = vsel %vm686_vm1, %v793_v39, %v2918_v26  ;;  %v3708_v36 = vunpack.i.l.bf16 %v2957_v52 }
 0x227   : > { %2254 = vrot.lane.b32.xlu1 %v2253_v48, %s2507_s14  ;;  %v800_v54 = vsel %vm686_vm1, %v799_v18, %v2918_v26  ;;  %v802_v31 = vsel %vm686_vm1, %v801_v53, %v2918_v26  ;;  %v2278_v50 = vpack.i.bf16 0.0, %v2963_v14  ;;  %v1346_v20 = vmax.f32 %v1306_v62, %v3170_v3 }
 0x228   : > { %v1444_v6 = vmax.f32 %v1436_v16, %v2112_v5  ;;  %v2268_v59 = vpack.i.bf16 %v802_v31, %v800_v54  ;;  %v1445_v43 = vmax.f32 %v1437_v8, %v3708_v36  ;;  %v1347_v25 = vmax.f32 %v1307_v34, %v3177_v2 }
 0x229   : > { %v2107_v56 = vunpack.i.h.bf16 %v2951_v27  ;;  %v2165_v44 = vpop.permute.xlu0 %2164  ;;  %v2106_v52 = vunpack.i.l.bf16 %v2951_v27  ;;  %v2151_v39 = vunpack.i.l.bf16 %v3016_v40  ;;  %v2091_v14 = vunpack.i.l.bf16 %v3078_v10 }
 0x22a   : > { %v1452_v53 = vmax.f32 %v1444_v6, %v1331_v61  ;;  %v2167_v18 = vunpack.i.h.bf16 %v2165_v44  ;;  %v2166_v60 = vunpack.i.l.bf16 %v2165_v44  ;;  %2269 = vrot.lane.b32.xlu0 %v2268_v59, %s2510_s13  ;;  %v1453_v5 = vmax.f32 %v1445_v43, %v3055_v51 }
 0x22b   : > { %v2283_v62 = vpack.i.bf16 %v794_v57, %v792_v58  ;;  %v2152_v59 = vunpack.i.h.bf16 %v3016_v40  ;;  %v3216_v40 = vsel %vm686_vm1, %v693_v63, %v2918_v26 }
 0x22c   : > { %v1460_v48 = vpack.c.bf16 %v1452_v53, %v1452_v53  ;;  %v1251_v34 = vsel %vm582_vm0, -1e+30, %v2167_v18  ;;  %v1250_v16 = vsel %vm582_vm0, -1e+30, %v2166_v60  ;;  %v1461_v61 = vpack.c.bf16 %v1453_v5, %v1453_v5 }
 0x22d   : > { %v1355_v8 = vmax.f32 %v1347_v25, %v1251_v34  ;;  %v1406_v54 = vrot.slane %v1251_v34, 1  ;;  %v1354_v31 = vmax.f32 %v1346_v20, %v1250_v16  ;;  %v1404_v6 = vrot.slane %v1250_v16, 1 }
 0x22e   : > { %2284 = vrot.lane.b32.xlu2 %v2283_v62, %s2510_s13  ;;  %v3203_v27 = vunpack.c.l.b16 %v1460_v48  ;;  %v3205_v51 = vunpack.c.l.b16 %v1461_v61  ;;  %v3709_v20 = vunpack.i.h.bf16 %v2955_v30  ;;  %v1298_v53 = vsel %vm582_vm0, -1e+30, %v3060_v1 }
 0x22f   : > { %v1387_v36 = vmax.f32 %v1355_v8, %v2107_v56  ;;  %v1407_v58 = vsel %vm686_vm1, %v1406_v54, %v3038_v21  ;;  %v1386_v57 = vmax.f32 %v1354_v31, %v2106_v52  ;;  %v1405_v43 = vsel %vm686_vm1, %v1404_v6, %v3038_v21  ;;  %2279 = vrot.lane.b32.xlu1 %v2278_v50, %s2505_s7 }
 0x230   : > { %v2273_v25 = vpack.i.bf16 %v2091_v14, %v3709_v20  ;;  %v1487_v44 = vpack.c.b16 %v3205_v51, %v3203_v27  ;;  %v585_v56 = vsel %vm582_vm0, 0.0, %v2151_v39  ;;  %v586_v50 = vsel %vm582_vm0, 0.0, %v2152_v59  ;;  %v3300_v51 = vpop.permute.xlu1 %2189 }
 0x231   : > { %v1427_v18 = vmax.f32 %v1387_v36, %v1407_v58  ;;  %v1426_v60 = vmax.f32 %v1386_v57, %v1405_v43  ;;  %v3223_v5 = vpop.permute.xlu0 %2169  ;;  %v795_v52 = vrot.slane %v585_v56, 1  ;;  %v803_v14 = vrot.slane %v3147_v15, 1 }
 0x232   : > { %2274 = vrot.lane.b32.xlu0 %v2273_v25, %s2506_s11  ;;  %v1322_v62 = vrot.slane %v1298_v53, 1  ;;  %v2288_v39 = vpack.i.bf16 %v3216_v40, %v3064_v41  ;;  %v805_v1 = vrot.slane %v3144_v24, 1  ;;  %v2298_v48 = vpack.i.bf16 %v586_v50, %v585_v56 }
 0x233   : > { %v1435_v30 = vmax.f32 %v1427_v18, %v3090_v19  ;;  %v1434_v63 = vmax.f32 %v1426_v60, %v3104_v35  ;;  %v3710_v16 = vunpack.i.l.bf16 %v3099_v12  ;;  %v797_v8 = vrot.slane %v586_v50, 1 }
 0x234   : > { %v1305_v19 = vmax.f32 %v1298_v53, %v2966_v37  ;;  %v1323_v24 = vsel %vm686_vm1, %v1322_v62, %v3038_v21  ;;  %v2293_v15 = vpack.i.bf16 %v2918_v26, %v3029_v13  ;;  %v804_v12 = vsel %vm686_vm1, %v803_v14, %v2918_v26 }
 0x235   : > { %v1442_v34 = vmax.f32 %v1434_v63, %v2102_v9  ;;  %v1443_v61 = vmax.f32 %v1435_v30, %v3710_v16  ;;  %v796_v9 = vsel %vm686_vm1, %v795_v52, %v2918_v26  ;;  %v1344_v54 = vmax.f32 %v3038_v21, -1e+30 }
 0x236   : > { %2289 = vrot.lane.b32.xlu2 %v2288_v39, %s2496_s15  ;;  %v798_v13 = vsel %vm686_vm1, %v797_v8, %v2918_v26  ;;  %v2131_v57 = vunpack.i.l.bf16 %v2982_v0  ;;  %v1345_v43 = vmax.f32 %v1305_v19, %v1323_v24  ;;  %v3711_v19 = vunpack.i.l.bf16 %v2976_v33 }
 0x237   : > { %2299 = vrot.lane.b32.xlu1 %v2298_v48, %s2507_s14  ;;  %v1450_v35 = vmax.f32 %v1442_v34, %v3177_v2  ;;  %v1451_v41 = vmax.f32 %v1443_v61, %v3131_v4  ;;  %v806_v4 = vsel %vm686_vm1, %v805_v1, %v2918_v26  ;;  %v2132_v2 = vunpack.i.h.bf16 %v2982_v0 }
 0x238   : > { %v2303_v60 = vpack.i.bf16 %v806_v4, %v804_v12  ;;  %v2318_v1 = vpack.i.bf16 %v798_v13, %v796_v9  ;;  %v2308_v61 = vpack.i.bf16 %v2971_v32, %v3126_v7 }
 0x239   : > { %v2185_v31 = vpop.permute.xlu0 %2184  ;;  %v1458_v6 = vpack.c.bf16 %v1450_v35, %v1450_v35  ;;  %v1459_v59 = vpack.c.bf16 %v1451_v41, %v1451_v41 }
 0x23a   : > { %v2187_v36 = vunpack.i.h.bf16 %v2185_v31  ;;  %v2186_v58 = vunpack.i.l.bf16 %v2185_v31  ;;  %2294 = vrot.lane.b32.xlu0 %v2293_v15, %s2509_s23 }
 0x23b   : > { %v1479_v20 = vunpack.c.l.b16 %v1458_v6  ;;  %v1480_v25 = vunpack.c.l.b16 %v1459_v59  ;;  %v2210_v59 = vpop.permute.xlu1 %2209 }
 0x23c   : > { %v1249_v56 = vsel %vm582_vm0, -1e+30, %v2187_v36  ;;  %v1248_v18 = vsel %vm582_vm0, -1e+30, %v2186_v58 }
 0x23d   : > { %v1353_v50 = vmax.f32 %v1345_v43, %v1249_v56  ;;  %v1402_v30 = vrot.slane %v1249_v56, 1  ;;  %v1352_v63 = vmax.f32 %v1344_v54, %v1248_v18  ;;  %v1400_v52 = vrot.slane %v1248_v18, 1  ;;  %v985_v54 = vld [vmem:[%s3695_s1 + $0x8] sm:$0x1] }
 0x23e   : > { %773 = vrot.lane.b32.xlu2 %v2861_v42, %s2497_s16  ;;  %v1486_v14 = vpack.c.b16 %v1480_v25, %v1479_v20  ;;  %v1015_v27 = vunpack.c.l.b16 %v985_v54  ;;  %v2212_v25 = vunpack.i.h.bf16 %v2210_v59  ;;  %v2211_v56 = vunpack.i.l.bf16 %v2210_v59 }
 0x23f   : > { %v1385_v26 = vmax.f32 %v1353_v50, %v2132_v2  ;;  %v1403_v0 = vsel %vm686_vm1, %v1402_v30, %v3038_v21  ;;  %v1384_v62 = vmax.f32 %v1352_v63, %v2131_v57  ;;  %v1401_v39 = vsel %vm686_vm1, %v1400_v52, %v3038_v21  ;;  %2304 = vrot.lane.b32.xlu1 %v2303_v60, %s2510_s13 }
 0x240   : > { %1856 = vmatmul.msk.bf16.vlgmr.msra.gmra.mxu3 %vm903_vm2, %v1486_v14 }
 0x241   : > { %v1425_v48 = vmax.f32 %v1385_v26, %v1403_v0  ;;  %v1424_v34 = vmax.f32 %v1384_v62, %v1401_v39  ;;  %v2141_v26 = vunpack.i.l.bf16 %v2997_v17 }
 0x242   : > { %2319 = vrot.lane.b32.xlu0 %v2318_v1, %s2510_s13 }
 0x243   : > { %v1433_v42 = vmax.f32 %v1425_v48, %v3137_v38  ;;  %v1432_v16 = vmax.f32 %v1424_v34, %v1298_v53  ;;  %v2323_v38 = vpack.i.bf16 %v2987_v29, %v3216_v40  ;;  %v3712_v29 = vpack.c.b16 %v3101_v28, %v3094_v49  ;;  %v1873_v28 = vld [vmem:[%s3695_s1] sm:$0xff] }
 0x245   : > { %v1440_v8 = vmax.f32 %v1432_v16, %v2966_v37  ;;  %v1441_v21 = vmax.f32 %v1433_v42, %v3711_v19 }
 0x246   : > { %2314 = vrot.lane.b32.xlu2 %v3078_v10, %s2505_s7  ;;  %v2195_v10 = vpop.permute.xlu0 %2194  ;;  %s2444_s7 = scalar_lea.hbm %s3699_s5, 128 }
 0x247   : > { %2309 = vrot.lane.b32.xlu1 %v2308_v61, %s2498_s17  ;;  %v1448_v35 = vmax.f32 %v1440_v8, %v1323_v24  ;;  %v1449_v41 = vmax.f32 %v1441_v21, %v3170_v3  ;;  %v2197_v0 = vunpack.i.h.bf16 %v2195_v10  ;;  %v2196_v1 = vunpack.i.l.bf16 %v2195_v10 }
 0x249   : > { %v1456_v53 = vpack.c.bf16 %v1448_v35, %v1448_v35  ;;  %v1457_v15 = vpack.c.bf16 %v1449_v41, %v1449_v41 }
 0x24a   : > { %2324 = vrot.lane.b32.xlu0 %v2323_v38, %s2509_s23  ;;  %s1874_s23 = sshll.u32 %s2563_s22, 6 }
 0x24b   : > { %v1477_v12 = vunpack.c.l.b16 %v1456_v53  ;;  %v1478_v37 = vunpack.c.l.b16 %v1457_v15  ;;  %s1753_s13 = scalar_lea.hbm %s3699_s5, %s1874_s23 }
 0x24c   : > { %s1756_s17 = sshll.u32 %s1753_s13, 4  ;;  %s1757_s17 = int_to_ptr.hbm [resolvable:$true] %s1756_s17 }
 0x24d   : > { %v1485_v9 = vpack.c.b16 %v1478_v37, %v1477_v12  ;;  %s2438_s8 = sshra.s32 %s1757_s17, 4  ;;  %s2439_s8 = int_to_ptr.hbm [resolvable:$true] %s2438_s8 }
 0x24e   : > { %v3295_v40 = vpop.permute.xlu0 %2204  ;;  %s2440_s28 = scalar_lea.hbm %s2439_s8, 64  ;;  %p2445_p0 = scmp.lt.s32.totalorder %s2439_s8, %s3699_s5 }
 0x24f   : > { %1855 = vmatmul.msk.bf16.vlgmr.msra.gmra.mxu1 %vm903_vm2, %v1485_v9  ;;  %p2441_p6 = scmp.ne.s32.totalorder %s2439_s8, %s2440_s28  ;;  %p2446_p1 = scmp.lt.s32.totalorder %s2444_s7, %s2440_s28 }
 0x250   : > { %1857 = vmatmul.msk.bf16.gmra.mxu3 %vm903_vm2, %v1487_v44  ;;  %v1017_v44 = vpack.c.b16 %v1015_v27, %v1015_v27 }
 0x251   : > { %p2442_p9 = pnand %p2441_p6, %p2592_p11  ;;  %p2447_p3 = por %p2446_p1, %p2445_p0 }
 0x252   : > { %v1033_v6 = vsel %vm582_vm0, %v1017_v44, 0 }
 0x253   : > { %1041 = vmatpush.bf16.msra.mxu0 %v1033_v6  ;;  %1894 = vmatpush.bf16.msra.mxu2 %v1033_v6  ;;  %p2443_p13 = pneg %p2442_p9 }
 0x255   : > { %p2448_p4 = pnand %p2447_p3, %p2443_p13 }
 0x256   : > { %v3302_v31 = vpop.permute.xlu0 %2239 }
 0x257   : > { %v3287_v33 = vpop.permute.xlu2 %2199  ;;  %1042 = vmatpush.bf16.msra.mxu0 %v1873_v28  ;;  %1895 = vmatpush.bf16.msra.mxu2 %v1873_v28 }
 0x25e   : > { %v3310_v4 = vpop.permute.xlu0 %2249 }
 0x25f   : > { %v3289_v3 = vpop.permute.xlu2 %2214 }
 0x260   : > { %1858 = vmatmul.msk.bf16.gmra.mxu3 %vm903_vm2, %v3712_v29 }
 0x266   : > { %v2260_v18 = vpop.permute.xlu0 %2259 }
 0x267   : > { %v2220_v24 = vpop.permute.xlu2 %2219  ;;  %v2262_v30 = vunpack.i.h.bf16 %v2260_v18  ;;  %v2261_v63 = vunpack.i.l.bf16 %v2260_v18 }
 0x268   : > { %v2222_v35 = vunpack.i.h.bf16 %v2220_v24  ;;  %v2221_v41 = vunpack.i.l.bf16 %v2220_v24 }
 0x270   : > { %v3305_v49 = vpop.permute.xlu2 %2229 }
 0x271   : > { %v2232_v24 = vunpack.i.h.bf16 %v3305_v49  ;;  %v2231_v6 = vunpack.i.l.bf16 %v3305_v49 }
 0x272   : > { %v3312_v13 = vpop.permute.xlu1 %2224 }
 0x273   : > { %v909_v28 = vsel %vm903_vm2, %v2907_v23, %v2232_v24  ;;  %v908_v59 = vsel %vm903_vm2, %v2971_v32, %v2231_v6  ;;  %v2172_v6 = vunpack.i.h.bf16 %v3223_v5 }
 0x278   : > { %v2235_v2 = vpop.permute.xlu2 %2234 }
 0x279   : > { %v2237_v36 = vunpack.i.h.bf16 %v2235_v2  ;;  %v2236_v58 = vunpack.i.l.bf16 %v2235_v2  ;;  %v2207_v2 = vunpack.i.h.bf16 %v3295_v40 }
 0x27a   : > { %v2245_v62 = vpop.permute.xlu1 %2244 }
 0x27b   : > { %v905_v43 = vsel %vm903_vm2, %v2910_v46, %v2237_v36  ;;  %v904_v20 = vsel %vm903_vm2, 0.0, %v2236_v58  ;;  %v2137_v46 = vunpack.i.h.bf16 %v3011_v11  ;;  %v2247_v61 = vunpack.i.h.bf16 %v2245_v62 }
 0x27c   : > { %v913_v60 = vsel %vm912_vm3, %v904_v20, %v2211_v56  ;;  %v914_v50 = vsel %vm912_vm3, %v905_v43, %v2212_v25  ;;  %v2246_v8 = vunpack.i.l.bf16 %v2245_v62  ;;  %v2206_v36 = vunpack.i.l.bf16 %v3295_v40 }
 0x27d   : > { %v922_v52 = vsel %vm921_vm4, %v913_v60, %v2261_v63  ;;  %v923_v14 = vsel %vm921_vm4, %v914_v50, %v2262_v30  ;;  %v2067_v25 = vunpack.i.h.bf16 %v2898_v55  ;;  %v2136_v56 = vunpack.i.l.bf16 %v3011_v11 }
 0x27e   : > { %v931_v42 = vsel %vm930_vm5, %v922_v52, %v2137_v46  ;;  %v932_v16 = vsel %vm930_vm5, %v923_v14, %v2141_v26  ;;  %v917_v49 = vsel %vm912_vm3, %v908_v59, %v2206_v36  ;;  %v918_v18 = vsel %vm912_vm3, %v909_v28, %v2207_v2 }
 0x27f   : > { %v2192_v52 = vunpack.i.h.bf16 %v3300_v51  ;;  %v2191_v55 = vunpack.i.l.bf16 %v3300_v51  ;;  %v2242_v11 = vunpack.i.h.bf16 %v3302_v31  ;;  %v2241_v14 = vunpack.i.l.bf16 %v3302_v31 }
 0x280   : > { %v3314_v57 = vpop.permute.xlu2 %2264  ;;  %v2216_v62 = vunpack.i.l.bf16 %v3289_v3  ;;  %v2202_v59 = vunpack.i.h.bf16 %v3287_v33  ;;  %v2201_v2 = vunpack.i.l.bf16 %v3287_v33 }
 0x288   : > { %v2285_v39 = vpop.permute.xlu2 %2284 }
 0x289   : > { %v2287_v48 = vunpack.i.h.bf16 %v2285_v39  ;;  %v2286_v34 = vunpack.i.l.bf16 %v2285_v39 }
 0x28b   : > { %v940_v19 = vsel %vm939_vm6, %v931_v42, %v2286_v34  ;;  %v941_v21 = vsel %vm939_vm6, %v932_v16, %v2287_v48 }
 0x28c   : > { %v949_v38 = vsel %vm948_vm7, %v940_v19, %v2196_v1  ;;  %v950_v53 = vsel %vm948_vm7, %v941_v21, %v2197_v0  ;;  %v2217_v0 = vunpack.i.h.bf16 %v3289_v3 }
 0x28d   : > { %v958_v15 = vsel %vm957_vm8, %v949_v38, %v2246_v8  ;;  %v959_v12 = vsel %vm957_vm8, %v950_v53, %v2247_v61  ;;  %v2252_v38 = vunpack.i.h.bf16 %v3310_v4  ;;  %v2251_v53 = vunpack.i.l.bf16 %v3310_v4 }
 0x28e   : > { %v967_v37 = vsel %vm966_vm9, %v958_v15, %v2221_v41  ;;  %v968_v9 = vsel %vm966_vm9, %v959_v12, %v2222_v35  ;;  %v2227_v15 = vunpack.i.h.bf16 %v3312_v13  ;;  %v2226_v12 = vunpack.i.l.bf16 %v3312_v13 }
 0x28f   : > { %v975_v10 = vpack.c.bf16 %v967_v37, %v967_v37  ;;  %v976_v29 = vpack.c.bf16 %v968_v9, %v968_v9  ;;  %v2267_v37 = vunpack.i.h.bf16 %v3314_v57  ;;  %v2266_v9 = vunpack.i.l.bf16 %v3314_v57 }
 0x290   : > { %v2290_v8 = vpop.permute.xlu2 %2289  ;;  %v910_v24 = vsel %vm903_vm2, %v2904_v22, %v2251_v53  ;;  %v2171_v13 = vunpack.i.l.bf16 %v3223_v5 }
 0x291   : > { %v998_v54 = vunpack.c.l.b16 %v975_v10  ;;  %v999_v27 = vunpack.c.l.b16 %v976_v29  ;;  %v919_v57 = vsel %vm912_vm3, %v910_v24, %v2226_v12  ;;  %v2292_v36 = vunpack.i.h.bf16 %v2290_v8  ;;  %v3418_v24 = vld [vmem:[%s3698_s4] ss:$0 sm:$0xff] }
 0x293   : > { %v1006_v44 = vpack.c.b16 %v999_v27, %v998_v54  ;;  %v2142_v27 = vunpack.i.h.bf16 %v2997_v17  ;;  %v928_v17 = vsel %vm921_vm4, %v919_v57, %v2266_v9 }
 0x295   : > { %1843 = vmatmul.msk.bf16.vlgmr.msra.gmra.mxu0 %vm1019_vm10, %v1006_v44  ;;  %v911_v44 = vsel %vm903_vm2, %v3020_v47, %v2252_v38  ;;  %v937_v33 = vsel %vm930_vm5, %v928_v17, %v2142_v27 }
 0x296   : > { %v920_v28 = vsel %vm912_vm3, %v911_v44, %v2227_v15 }
 0x297   : > { %v929_v47 = vsel %vm921_vm4, %v920_v28, %v2267_v37 }
 0x298   : > { %v774_v4 = vpop.permute.xlu2 %773 }
 0x299   : > { %v2255_v58 = vpop.permute.xlu1 %2254 }
 0x29a   : > { %v2257_v43 = vunpack.i.h.bf16 %v2255_v58  ;;  %v2256_v20 = vunpack.i.l.bf16 %v2255_v58  ;;  %v2291_v58 = vunpack.i.l.bf16 %v2290_v8 }
 0x29c   : > { %v927_v23 = vsel %vm921_vm4, %v918_v18, %v2257_v43  ;;  %v926_v60 = vsel %vm921_vm4, %v917_v49, %v2256_v20  ;;  %v2270_v32 = vpop.permute.xlu0 %2269 }
 0x29d   : > { %v2272_v50 = vunpack.i.h.bf16 %v2270_v32  ;;  %v2271_v30 = vunpack.i.l.bf16 %v2270_v32  ;;  %v935_v40 = vsel %vm930_vm5, %v926_v60, %v2067_v25  ;;  %v936_v63 = vsel %vm930_vm5, %v927_v23, %v2136_v56 }
 0x29e   : > { %v938_v60 = vsel %vm930_vm5, %v929_v47, %v2171_v13 }
 0x29f   : > { %v944_v46 = vsel %vm939_vm6, %v935_v40, %v2271_v30  ;;  %v945_v26 = vsel %vm939_vm6, %v936_v63, %v2272_v50 }
 0x2a0   : > { %v953_v39 = vsel %vm948_vm7, %v944_v46, %v2191_v55  ;;  %v954_v1 = vsel %vm948_vm7, %v945_v26, %v2192_v52 }
 0x2a1   : > { %v2280_v48 = vpop.permute.xlu1 %2279  ;;  %v962_v34 = vsel %vm957_vm8, %v953_v39, %v2241_v14  ;;  %v963_v51 = vsel %vm957_vm8, %v954_v1, %v2242_v11 }
 0x2a2   : > { %v971_v42 = vsel %vm966_vm9, %v962_v34, %v2216_v62  ;;  %v972_v31 = vsel %vm966_vm9, %v963_v51, %v2217_v0  ;;  %v2282_v18 = vunpack.i.h.bf16 %v2280_v48  ;;  %v2281_v23 = vunpack.i.l.bf16 %v2280_v48  ;;  %v2315_v48 = vpop.permute.xlu2 %2314 }
 0x2a3   : > { %v979_v16 = vpack.c.bf16 %v971_v42, %v971_v42  ;;  %v980_v61 = vpack.c.bf16 %v972_v31, %v972_v31 }
 0x2a4   : > { %v2275_v19 = vpop.permute.xlu0 %2274 }
 0x2a5   : > { %v1002_v21 = vunpack.c.l.b16 %v979_v16  ;;  %v1003_v35 = vunpack.c.l.b16 %v980_v61  ;;  %v2277_v29 = vunpack.i.h.bf16 %v2275_v19  ;;  %v2276_v54 = vunpack.i.l.bf16 %v2275_v19 }
 0x2a7   : > { %v1008_v3 = vpack.c.b16 %v1003_v35, %v1002_v21  ;;  %v907_v22 = vsel %vm903_vm2, %v3126_v7, %v2277_v29  ;;  %v906_v5 = vsel %vm903_vm2, %v2974_v45, %v2276_v54  ;;  %v2317_v35 = vunpack.i.h.bf16 %v2315_v48 }
 0x2a8   : > { %v915_v32 = vsel %vm912_vm3, %v906_v5, %v2291_v58  ;;  %v916_v50 = vsel %vm912_vm3, %v907_v22, %v2292_v36 }
 0x2a9   : > { %v2300_v41 = vpop.permute.xlu1 %2299  ;;  %1845 = vmatmul.msk.bf16.vlgmr.msra.gmra.mxu2 %vm1019_vm10, %v1008_v3  ;;  %v2316_v3 = vunpack.i.l.bf16 %v2315_v48 }
 0x2aa   : > { %v2302_v20 = vunpack.i.h.bf16 %v2300_v41  ;;  %v2301_v25 = vunpack.i.l.bf16 %v2300_v41 }
 0x2ac   : > { %v2295_v10 = vpop.permute.xlu0 %2294  ;;  %v925_v11 = vsel %vm921_vm4, %v916_v50, %v2302_v20  ;;  %v924_v14 = vsel %vm921_vm4, %v915_v32, %v2301_v25 }
 0x2ad   : > { %v2297_v40 = vunpack.i.h.bf16 %v2295_v10  ;;  %v2296_v63 = vunpack.i.l.bf16 %v2295_v10  ;;  %v933_v42 = vsel %vm930_vm5, %v924_v14, %v2172_v6  ;;  %v934_v31 = vsel %vm930_vm5, %v925_v11, %v774_v4 }
 0x2b1   : > { %v2305_v43 = vpop.permute.xlu1 %2304 }
 0x2b2   : > { %v2307_v56 = vunpack.i.h.bf16 %v2305_v43  ;;  %v2306_v49 = vunpack.i.l.bf16 %v2305_v43 }
 0x2b4   : > { %v946_v7 = vsel %vm939_vm6, %v937_v33, %v2306_v49  ;;  %v947_v30 = vsel %vm939_vm6, %v938_v60, %v2307_v56  ;;  %v2320_v45 = vpop.permute.xlu0 %2319 }
 0x2b5   : > { %v955_v52 = vsel %vm948_vm7, %v946_v7, %v2201_v2  ;;  %v956_v55 = vsel %vm948_vm7, %v947_v30, %v2202_v59  ;;  %v2322_v0 = vunpack.i.h.bf16 %v2320_v45  ;;  %v2321_v62 = vunpack.i.l.bf16 %v2320_v45 }
 0x2b6   : > { %v964_v46 = vsel %vm957_vm8, %v955_v52, %v2281_v23  ;;  %v965_v26 = vsel %vm957_vm8, %v956_v55, %v2282_v18 }
 0x2b7   : > { %v973_v39 = vsel %vm966_vm9, %v964_v46, %v2296_v63  ;;  %v974_v1 = vsel %vm966_vm9, %v965_v26, %v2297_v40  ;;  %v942_v41 = vsel %vm939_vm6, %v933_v42, %v2321_v62  ;;  %v943_v38 = vsel %vm939_vm6, %v934_v31, %v2322_v0 }
 0x2b8   : > { %v981_v34 = vpack.c.bf16 %v973_v39, %v973_v39  ;;  %v982_v51 = vpack.c.bf16 %v974_v1, %v974_v1 }
 0x2b9   : > { %v2310_v16 = vpop.permute.xlu1 %2309 }
 0x2ba   : > { %v2312_v61 = vunpack.i.h.bf16 %v2310_v16  ;;  %v2311_v8 = vunpack.i.l.bf16 %v2310_v16  ;;  %v1004_v19 = vunpack.c.l.b16 %v981_v34  ;;  %v1005_v21 = vunpack.c.l.b16 %v982_v51 }
 0x2bc   : > { %v951_v53 = vsel %vm948_vm7, %v942_v41, %v2311_v8  ;;  %v952_v15 = vsel %vm948_vm7, %v943_v38, %v2312_v61  ;;  %v2325_v12 = vpop.permute.xlu0 %2324  ;;  %v1009_v37 = vpack.c.b16 %v1005_v21, %v1004_v19 }
 0x2bd   : > { %v2327_v9 = vunpack.i.h.bf16 %v2325_v12  ;;  %v2326_v10 = vunpack.i.l.bf16 %v2325_v12  ;;  %v960_v29 = vsel %vm957_vm8, %v951_v53, %v2316_v3  ;;  %v961_v54 = vsel %vm957_vm8, %v952_v15, %v2317_v35 }
 0x2be   : > { %1846 = vmatmul.msk.bf16.gmra.mxu2 %vm1019_vm10, %v1009_v37 }
 0x2bf   : > { %v969_v27 = vsel %vm966_vm9, %v960_v29, %v2326_v10  ;;  %v970_v44 = vsel %vm966_vm9, %v961_v54, %v2327_v9 }
 0x2c0   : > { %v977_v4 = vpack.c.bf16 %v969_v27, %v969_v27  ;;  %v978_v6 = vpack.c.bf16 %v970_v44, %v970_v44 }
 0x2c2   : > { %v1000_v13 = vunpack.c.l.b16 %v977_v4  ;;  %v1001_v28 = vunpack.c.l.b16 %v978_v6 }
 0x2c3   : > { %v1518_v57 = vpop.f32.mrf.mxu3 }
 0x2c4   : > { %v1519_v59 = vadd.f32 %v3418_v24, %v1518_v57  ;;  %v1007_v2 = vpack.c.b16 %v1001_v28, %v1000_v13 }
 0x2c6   : > { %v1861_v17 = vmul.f32 -1.442695, %v1519_v59  ;;  %1844 = vmatmul.msk.bf16.gmra.mxu0 %vm1019_vm10, %v1007_v2 }
 0x2c8   : > { %2330 = vpow2.f32 %v1861_v17 }
 0x2cb   : > { %v1520_v47 = vpop.f32.mrf.mxu3 }
 0x2cc   : > { %v3423_v36 = vadd.f32 %v3418_v24, %v1520_v47  ;;  %v1513_v58 = vpop.f32.mrf.mxu1 }
 0x2cd   : > { %v3426_v22 = vadd.f32 %v3418_v24, %v1513_v58 }
 0x2ce   : > { %v2331_v5 = vpop.eup %2330  ;;  %v1862_v43 = vmul.f32 -1.442695, %v3423_v36 }
 0x2cf   : > { %v1559_v20 = vadd.f32 1.0, %v2331_v5  ;;  %v1859_v25 = vmul.f32 -1.442695, %v3426_v22 }
 0x2d0   : > { %2332 = vpow2.f32 %v1862_v43 }
 0x2d1   : > { %2334 = vrcp.f32 %v1559_v20  ;;  %v1606_v52 = vand.u32 2147483648, %v1559_v20  ;;  %v1604_v14 = vand.u32 2147483647, %v1559_v20  ;;  %vm1600_vm12 = vweird.f32 %v1559_v20 }
 0x2d2   : > { %2336 = vpow2.f32 %v1859_v25 }
 0x2d3   : > { %v1523_v56 = vpop.f32.mrf.mxu3  ;;  %v1607_v39 = vor.u32 1.1754944e-38, %v1606_v52  ;;  %vm1605_vm14 = vcmp.eq.f32.partialorder %v1604_v14, 8.507059e+37 }
 0x2d4   : > { %v3431_v49 = vadd.f32 %v3418_v24, %v1523_v56  ;;  %v1515_v18 = vpop.f32.mrf.mxu1 }
 0x2d5   : > { %v3434_v23 = vadd.f32 %v3418_v24, %v1515_v18 }
 0x2d6   : > { %v2333_v33 = vpop.eup %2332  ;;  %v1863_v60 = vmul.f32 -1.442695, %v3431_v49 }
 0x2d7   : > { %v2335_v32 = vpop.eup %2334  ;;  %v3437_v50 = vadd.f32 1.0, %v2333_v33  ;;  %v1860_v7 = vmul.f32 -1.442695, %v3434_v23 }
 0x2d8   : > { %v2337_v30 = vpop.eup %2336  ;;  %v1596_v45 = vmul.f32 %v2335_v32, %v1559_v20  ;;  %2338 = vpow2.f32 %v1863_v60  ;;  %vm1601_vm11 = vweird.f32 %v2335_v32 }
 0x2d9   : > { %2340 = vrcp.f32 %v3437_v50  ;;  %v1557_v63 = vadd.f32 1.0, %v2337_v30  ;;  %vm1602_vm13 = vmor %vm1600_vm12, %vm1601_vm11  ;;  %vm1615_vm6 = vweird.f32 %v3437_v50  ;;  %v1621_v2 = vand.u32 2147483648, %v3437_v50 }
 0x2da   : > { %v1597_v40 = vsub.f32 1.0, %v1596_v45  ;;  %2342 = vpow2.f32 %v1860_v7  ;;  %v1619_v47 = vand.u32 2147483647, %v3437_v50 }
 0x2db   : > { %v1525_v55 = vpop.f32.mrf.mxu3  ;;  %2344 = vrcp.f32 %v1557_v63  ;;  %v1574_v38 = vand.u32 2147483647, %v1557_v63  ;;  %v1576_v53 = vand.u32 2147483648, %v1557_v63  ;;  %vm1570_vm0 = vweird.f32 %v1557_v63 }
 0x2dc   : > { %v1598_v11 = vmul.f32 %v2335_v32, %v1597_v40  ;;  %v3442_v46 = vadd.f32 %v3418_v24, %v1525_v55  ;;  %vm1620_vm9 = vcmp.eq.f32.partialorder %v1619_v47, 8.507059e+37 }
 0x2dd   : > { %vm1575_vm2 = vcmp.eq.f32.partialorder %v1574_v38, 8.507059e+37  ;;  %v1577_v44 = vor.u32 1.1754944e-38, %v1576_v53 }
 0x2de   : > { %v2339_v26 = vpop.eup %2338  ;;  %v1599_v0 = vadd.f32 %v2335_v32, %v1598_v11  ;;  %v1864_v48 = vmul.f32 -1.442695, %v3442_v46 }
 0x2df   : > { %v3444_v62 = vpop.eup %2340  ;;  %v3446_v1 = vadd.f32 1.0, %v2339_v26 }
 0x2e0   : > { %v2343_v34 = vpop.eup %2342  ;;  %v1603_v51 = vsel %vm1602_vm13, %v2335_v32, %v1599_v0  ;;  %v1611_v42 = vmul.f32 %v3444_v62, %v3437_v50  ;;  %vm1616_vm4 = vweird.f32 %v3444_v62  ;;  %v1622_v32 = vor.u32 1.1754944e-38, %v1621_v2 }
 0x2e1   : > { %v1608_v31 = vsel %vm1605_vm14, %v1607_v39, %v1603_v51  ;;  %2346 = vrcp.f32 %v3446_v1  ;;  %v2345_v16 = vpop.eup %2344  ;;  %v3452_v8 = vadd.f32 1.0, %v2343_v34  ;;  %vm3476_vm7 = vmor %vm1615_vm6, %vm1616_vm4  ;;  %v1636_v52 = vand.u32 2147483648, %v3446_v1 }
 0x2e2   : > { %v1687_v61 = vmul.f32 %v1608_v31, %v1519_v59  ;;  %v1612_v19 = vsub.f32 1.0, %v1611_v42  ;;  %v1566_v21 = vmul.f32 %v2345_v16, %v1557_v63  ;;  %2348 = vpow2.f32 %v1864_v48 }
 0x2e3   : > { %v1528_v35 = vpop.f32.mrf.mxu3  ;;  %2350 = vrcp.f32 %v3452_v8  ;;  %vm1571_vm15 = vweird.f32 %v2345_v16  ;;  %v1591_v43 = vand.u32 2147483648, %v3452_v8  ;;  %vm1585_vm10 = vweird.f32 %v3452_v8 }
 0x2e4   : > { %1705 = vrot.lane.b32.xlu0 %v1687_v61, %s2496_s15  ;;  %v1567_v3 = vsub.f32 1.0, %v1566_v21  ;;  %v3457_v41 = vadd.f32 %v3418_v24, %v1528_v35  ;;  %v1613_v12 = vmul.f32 %v3444_v62, %v1612_v19  ;;  %vm1572_vm1 = vmor %vm1570_vm0, %vm1571_vm15  ;;  %vm1630_vm14 = vweird.f32 %v3446_v1 }
 0x2e5   : > { %v1634_v14 = vand.u32 2147483647, %v3446_v1  ;;  %v1637_v51 = vor.u32 1.1754944e-38, %v1636_v52 }
 0x2e6   : > { %v1568_v37 = vmul.f32 %v2345_v16, %v1567_v3  ;;  %v1865_v9 = vmul.f32 -1.442695, %v3457_v41  ;;  %v1614_v13 = vadd.f32 %v3444_v62, %v1613_v12 }
 0x2e7   : > { %v3459_v15 = vpop.eup %2346 }
 0x2e8   : > { %v1626_v10 = vmul.f32 %v3459_v15, %v3446_v1  ;;  %v2349_v29 = vpop.eup %2348  ;;  %v1569_v54 = vadd.f32 %v2345_v16, %v1568_v37  ;;  %2352 = vpow2.f32 %v1865_v9  ;;  %v1618_v33 = vsel %vm3476_vm7, %v3444_v62, %v1614_v13 }
 0x2e9   : > { %v2351_v27 = vpop.eup %2350  ;;  %v3465_v6 = vadd.f32 1.0, %v2349_v29  ;;  %v1623_v40 = vsel %vm1620_vm9, %v1622_v32, %v1618_v33  ;;  %vm1631_vm11 = vweird.f32 %v3459_v15 }
 0x2ea   : > { %v1627_v4 = vsub.f32 1.0, %v1626_v10  ;;  %v1573_v28 = vsel %vm1572_vm1, %v2345_v16, %v1569_v54  ;;  %v1581_v57 = vmul.f32 %v2351_v27, %v3452_v8  ;;  %vm1586_vm8 = vweird.f32 %v2351_v27  ;;  %vm1632_vm15 = vmor %vm1630_vm14, %vm1631_vm11 }
 0x2eb   : > { %v1530_v59 = vpop.f32.mrf.mxu3  ;;  %v1578_v17 = vsel %vm1575_vm2, %v1577_v44, %v1573_v28  ;;  %2354 = vrcp.f32 %v3465_v6  ;;  %vm1587_vm12 = vmor %vm1585_vm10, %vm1586_vm8  ;;  %v1688_v0 = vmul.f32 %v1623_v40, %v3423_v36  ;;  %v1651_v34 = vand.u32 2147483648, %v3465_v6 }
 0x2ec   : > { %v1685_v58 = vmul.f32 %v1578_v17, %v3426_v22  ;;  %v1582_v5 = vsub.f32 1.0, %v1581_v57  ;;  %v1628_v25 = vmul.f32 %v3459_v15, %v1627_v4  ;;  %v3482_v56 = vadd.f32 %v3418_v24, %v1530_v59 }
 0x2ed   : > { %v1589_v22 = vand.u32 2147483647, %v3452_v8  ;;  %v1592_v24 = vor.u32 1.1754944e-38, %v1591_v43  ;;  %v1649_v31 = vand.u32 2147483647, %v3465_v6  ;;  %vm1635_vm1 = vcmp.eq.f32.partialorder %v1634_v14, 8.507059e+37 }
 0x2ee   : > { %v2353_v18 = vpop.eup %2352  ;;  %v1583_v60 = vmul.f32 %v2351_v27, %v1582_v5  ;;  %1701 = vrot.lane.b32.xlu1 %v1685_v58, %s2496_s15  ;;  %v1866_v7 = vmul.f32 -1.442695, %v3482_v56  ;;  %v1629_v63 = vadd.f32 %v3459_v15, %v1628_v25  ;;  %vm1645_vm2 = vweird.f32 %v3465_v6  ;;  %v2329_v58 = vld [vmem:[%s3696_s2] ss:$0 sm:$0xff] }
 0x2ef   : > { %v1563_v50 = vadd.f32 1.0, %v2353_v18  ;;  %vm1590_vm13 = vcmp.eq.f32.partialorder %v1589_v22, 8.507059e+37  ;;  %v1652_v8 = vor.u32 1.1754944e-38, %v1651_v34  ;;  %vm1650_vm6 = vcmp.eq.f32.partialorder %v1649_v31, 8.507059e+37 }
 0x2f0   : > { %v1584_v30 = vadd.f32 %v2351_v27, %v1583_v60  ;;  %v1633_v48 = vsel %vm1632_vm15, %v3459_v15, %v1629_v63 }
 0x2f1   : > { %v2355_v45 = vpop.eup %2354  ;;  %2356 = vrcp.f32 %v1563_v50  ;;  %v1638_v36 = vsel %vm1635_vm1, %v1637_v51, %v1633_v48  ;;  %v1664_v53 = vand.u32 2147483647, %v1563_v50  ;;  %v1666_v15 = vand.u32 2147483648, %v1563_v50 }
 0x2f2   : > { %v1588_v55 = vsel %vm1587_vm12, %v2351_v27, %v1584_v30  ;;  %v1641_v11 = vmul.f32 %v2355_v45, %v3465_v6  ;;  %2358 = vpow2.f32 %v1866_v7  ;;  %vm1646_vm0 = vweird.f32 %v2355_v45 }
 0x2f3   : > { %v1593_v26 = vsel %vm1590_vm13, %v1592_v24, %v1588_v55  ;;  %vm1647_vm4 = vmor %vm1645_vm2, %vm1646_vm0  ;;  %v1689_v3 = vmul.f32 %v1638_v36, %v3431_v49  ;;  %vm1660_vm8 = vweird.f32 %v1563_v50  ;;  %v1667_v10 = vor.u32 1.1754944e-38, %v1666_v15 }
 0x2f4   : > { %v1686_v62 = vmul.f32 %v1593_v26, %v3434_v23  ;;  %v1642_v39 = vsub.f32 1.0, %v1641_v11  ;;  %vm1665_vm10 = vcmp.eq.f32.partialorder %v1664_v53, 8.507059e+37 }
 0x2f6   : > { %v1643_v42 = vmul.f32 %v2355_v45, %v1642_v39  ;;  %1703 = vrot.lane.b32.xlu2 %v1686_v62, %s2496_s15  ;;  %1707 = vrot.lane.b32.xlu1 %v1688_v0, %s2496_s15 }
 0x2f7   : > { %v2357_v1 = vpop.eup %2356 }
 0x2f8   : > { %v1644_v16 = vadd.f32 %v2355_v45, %v1643_v42  ;;  %v1656_v23 = vmul.f32 %v2357_v1, %v1563_v50  ;;  %v2359_v61 = vpop.eup %2358  ;;  %vm1661_vm7 = vweird.f32 %v2357_v1 }
 0x2f9   : > { %v1564_v35 = vadd.f32 1.0, %v2359_v61  ;;  %vm1662_vm9 = vmor %vm1660_vm8, %vm1661_vm7 }
 0x2fa   : > { %v1648_v19 = vsel %vm1647_vm4, %v2355_v45, %v1644_v16  ;;  %v1657_v21 = vsub.f32 1.0, %v1656_v23 }
 0x2fb   : > { %v1653_v38 = vsel %vm1650_vm6, %v1652_v8, %v1648_v19  ;;  %2360 = vrcp.f32 %v1564_v35  ;;  %v1681_v4 = vand.u32 2147483648, %v1564_v35  ;;  %v1679_v13 = vand.u32 2147483647, %v1564_v35 }
 0x2fc   : > { %v1690_v12 = vmul.f32 %v1653_v38, %v3442_v46  ;;  %v1658_v37 = vmul.f32 %v2357_v1, %v1657_v21  ;;  %vm1675_vm12 = vweird.f32 %v1564_v35 }
 0x2fd   : > { %v1682_v57 = vor.u32 1.1754944e-38, %v1681_v4  ;;  %vm1680_vm14 = vcmp.eq.f32.partialorder %v1679_v13, 8.507059e+37 }
 0x2fe   : > { %v1659_v9 = vadd.f32 %v2357_v1, %v1658_v37  ;;  %1711 = vrot.lane.b32.xlu0 %v1690_v12, %s2496_s15  ;;  %1709 = vrot.lane.b32.xlu2 %v1689_v3, %s2496_s15 }
 0x300   : > { %v1663_v29 = vsel %vm1662_vm9, %v2357_v1, %v1659_v9 }
 0x301   : > { %v1668_v54 = vsel %vm1665_vm10, %v1667_v10, %v1663_v29  ;;  %v2361_v49 = vpop.eup %2360 }
 0x302   : > { %v1691_v27 = vmul.f32 %v1668_v54, %v3457_v41  ;;  %v1671_v44 = vmul.f32 %v2361_v49, %v1564_v35  ;;  %vm1676_vm11 = vweird.f32 %v2361_v49 }
 0x303   : > { %vm1677_vm13 = vmor %vm1675_vm12, %vm1676_vm11 }
 0x304   : > { %1713 = vrot.lane.b32.xlu1 %v1691_v27, %s2496_s15  ;;  %v1672_v46 = vsub.f32 1.0, %v1671_v44 }
 0x306   : > { %v1673_v6 = vmul.f32 %v2361_v49, %v1672_v46 }
 0x308   : > { %v1674_v28 = vadd.f32 %v2361_v49, %v1673_v6 }
 0x30a   : > { %v1678_v59 = vsel %vm1677_vm13, %v2361_v49, %v1674_v28 }
 0x30b   : > { %v1683_v2 = vsel %vm1680_vm14, %v1682_v57, %v1678_v59 }
 0x30c   : > { %v1692_v17 = vmul.f32 %v1683_v2, %v3482_v56 }
 0x30e   : > { %1715 = vrot.lane.b32.xlu2 %v1692_v17, %s2496_s15  ;;  %s1838_s15 = sshll.u32 %s2628_s12, 6 }
 0x30f   : > { %s3578_s14 = scalar_lea.vmem [#allocation5], %s1838_s15 }
 0x310   : > { %s1754_s22 = sshll.u32 %s3578_s14, 4  ;;  %s1755_s22 = int_to_ptr.vmem [resolvable:$true] %s1754_s22 }
 0x312   : > { %v1044_v41 = vpop.f32.mrf.mxu0 }
 0x313   : > { %v3519_v20 = vadd.f32 %v2329_v58, %v1044_v41 }
 0x315   : > { %v1847_v18 = vmul.f32 -1.442695, %v3519_v20 }
 0x31a   : > { %v1046_v47 = vpop.f32.mrf.mxu0 }
 0x31b   : > { %v3516_v5 = vadd.f32 %v2329_v58, %v1046_v47 }
 0x31d   : > { %v1848_v43 = vmul.f32 -1.442695, %v3516_v5 }
 0x31f   : > { %2362 = vpow2.f32 %v1848_v43 }
 0x320   : > { %2364 = vpow2.f32 %v1847_v18 }
 0x325   : > { %v2363_v25 = vpop.eup %2362 }
 0x326   : > { %v1089_v60 = vadd.f32 1.0, %v2363_v25  ;;  %v2365_v32 = vpop.eup %2364 }
 0x327   : > { %v3527_v45 = vadd.f32 1.0, %v2365_v32 }
 0x328   : > { %v1122_v16 = vand.u32 2147483648, %v1089_v60  ;;  %vm1116_vm0 = vweird.f32 %v1089_v60  ;;  %v1120_v61 = vand.u32 2147483647, %v1089_v60 }
 0x329   : > { %vm1101_vm10 = vweird.f32 %v3527_v45  ;;  %v1105_v25 = vand.u32 2147483647, %v3527_v45 }
 0x32a   : > { %v1123_v53 = vor.u32 1.1754944e-38, %v1122_v16  ;;  %vm1121_vm2 = vcmp.eq.f32.partialorder %v1120_v61, 8.507059e+37 }
 0x32b   : > { %vm1106_vm12 = vcmp.eq.f32.partialorder %v1105_v25, 8.507059e+37 }
 0x32c   : > { %v1054_v33 = vpop.f32.mrf.mxu2 }
 0x32d   : > { %v3522_v56 = vadd.f32 %v2329_v58, %v1054_v33 }
 0x32f   : > { %v1851_v22 = vmul.f32 -1.442695, %v3522_v56 }
 0x331   : > { %2366 = vpow2.f32 %v1851_v22 }
 0x332   : > { %2368 = vrcp.f32 %v1089_v60 }
 0x334   : > { %v1056_v24 = vpop.f32.mrf.mxu2 }
 0x335   : > { %v3530_v63 = vadd.f32 %v2329_v58, %v1056_v24 }
 0x337   : > { %v2367_v50 = vpop.eup %2366  ;;  %v1852_v55 = vmul.f32 -1.442695, %v3530_v63 }
 0x338   : > { %v2369_v7 = vpop.eup %2368  ;;  %v3525_v30 = vadd.f32 1.0, %v2367_v50 }
 0x339   : > { %v1112_v40 = vmul.f32 %v2369_v7, %v1089_v60  ;;  %vm1117_vm15 = vweird.f32 %v2369_v7 }
 0x33a   : > { %2370 = vrcp.f32 %v3525_v30  ;;  %vm1118_vm1 = vmor %vm1116_vm0, %vm1117_vm15  ;;  %v1167_v46 = vand.u32 2147483648, %v3525_v30  ;;  %vm1161_vm6 = vweird.f32 %v3525_v30  ;;  %v1165_v6 = vand.u32 2147483647, %v3525_v30 }
 0x33b   : > { %2372 = vrcp.f32 %v3527_v45  ;;  %v1113_v52 = vsub.f32 1.0, %v1112_v40 }
 0x33c   : > { %2374 = vpow2.f32 %v1852_v55  ;;  %v1168_v47 = vor.u32 1.1754944e-38, %v1167_v46  ;;  %vm1166_vm9 = vcmp.eq.f32.partialorder %v1165_v6, 8.507059e+37 }
 0x33d   : > { %v1114_v26 = vmul.f32 %v2369_v7, %v1113_v52 }
 0x33f   : > { %v1115_v1 = vadd.f32 %v2369_v7, %v1114_v26 }
 0x340   : > { %v3534_v11 = vpop.eup %2370 }
 0x341   : > { %v1059_v14 = vpop.f32.mrf.mxu2  ;;  %v1157_v0 = vmul.f32 %v3534_v11, %v3525_v30  ;;  %v3540_v48 = vpop.eup %2372  ;;  %v1119_v35 = vsel %vm1118_vm1, %v2369_v7, %v1115_v1  ;;  %vm1162_vm4 = vweird.f32 %v3534_v11 }
 0x342   : > { %v3538_v62 = vadd.f32 %v2329_v58, %v1059_v14  ;;  %v1097_v31 = vmul.f32 %v3540_v48, %v3527_v45  ;;  %v2375_v23 = vpop.eup %2374  ;;  %v1124_v10 = vsel %vm1121_vm2, %v1123_v53, %v1119_v35  ;;  %vm3566_vm7 = vmor %vm1161_vm6, %vm1162_vm4  ;;  %vm1102_vm8 = vweird.f32 %v3540_v48 }
 0x343   : > { %v1049_v39 = vpop.f32.mrf.mxu0  ;;  %v1158_v36 = vsub.f32 1.0, %v1157_v0  ;;  %v3551_v15 = vadd.f32 1.0, %v2375_v23  ;;  %v1217_v4 = vmul.f32 %v1124_v10, %v3516_v5  ;;  %vm1103_vm11 = vmor %vm1101_vm10, %vm1102_vm8 }
 0x344   : > { %v3542_v34 = vadd.f32 %v2329_v58, %v1049_v39  ;;  %v1853_v51 = vmul.f32 -1.442695, %v3538_v62  ;;  %v1098_v21 = vsub.f32 1.0, %v1097_v31 }
 0x345   : > { %v1159_v3 = vmul.f32 %v3534_v11, %v1158_v36 }
 0x346   : > { %v1849_v42 = vmul.f32 -1.442695, %v3542_v34  ;;  %v1099_v44 = vmul.f32 %v3540_v48, %v1098_v21 }
 0x347   : > { %v1160_v54 = vadd.f32 %v3534_v11, %v1159_v3 }
 0x348   : > { %2376 = vpow2.f32 %v1849_v42  ;;  %v1100_v41 = vadd.f32 %v3540_v48, %v1099_v44 }
 0x349   : > { %2378 = vpow2.f32 %v1853_v51  ;;  %v1061_v8 = vpop.f32.mrf.mxu2  ;;  %v1164_v59 = vsel %vm3566_vm7, %v3534_v11, %v1160_v54 }
 0x34a   : > { %v3548_v19 = vadd.f32 %v2329_v58, %v1061_v8  ;;  %v1169_v18 = vsel %vm1166_vm9, %v1168_v47, %v1164_v59  ;;  %v1104_v60 = vsel %vm1103_vm11, %v3540_v48, %v1100_v41  ;;  %vm1176_vm9 = vweird.f32 %v3551_v15 }
 0x34b   : > { %v1051_v38 = vpop.f32.mrf.mxu0  ;;  %v1220_v7 = vmul.f32 %v1169_v18, %v3522_v56  ;;  %v1180_v59 = vand.u32 2147483647, %v3551_v15 }
 0x34c   : > { %v1854_v12 = vmul.f32 -1.442695, %v3548_v19  ;;  %v3554_v37 = vadd.f32 %v2329_v58, %v1051_v38  ;;  %v1107_v58 = vand.u32 2147483648, %v3527_v45 }
 0x34e   : > { %v2377_v9 = vpop.eup %2376  ;;  %2380 = vpow2.f32 %v1854_v12  ;;  %v1850_v27 = vmul.f32 -1.442695, %v3554_v37  ;;  %v1108_v50 = vor.u32 1.1754944e-38, %v1107_v58 }
 0x34f   : > { %v2379_v29 = vpop.eup %2378  ;;  %v1090_v49 = vadd.f32 1.0, %v2377_v9  ;;  %2382 = vrcp.f32 %v3551_v15 }
 0x350   : > { %v1704_v13 = vpop.permute.xlu2 %1703  ;;  %v3570_v57 = vadd.f32 1.0, %v2379_v29  ;;  %v1109_v52 = vsel %vm1106_vm12, %v1108_v50, %v1104_v60 }
 0x351   : > { %2384 = vrcp.f32 %v1090_v49  ;;  %v1726_v2 = vsel %vm912_vm3, %v1217_v4, %v1704_v13  ;;  %v1137_v55 = vand.u32 2147483648, %v1090_v49  ;;  %v1135_v0 = vand.u32 2147483647, %v1090_v49 }
 0x352   : > { %2386 = vpow2.f32 %v1850_v27  ;;  %1734 = vst.msk [vmem:[%s3578_s14 + $0x8] sm:$0xff] %vm930_vm5, %v1726_v2  ;;  %vm1131_vm14 = vweird.f32 %v1090_v49  ;;  %v1216_v42 = vmul.f32 %v1109_v52, %v3519_v20  ;;  %v1195_v50 = vand.u32 2147483647, %v3570_v57 }
 0x353   : > { %2388 = vrcp.f32 %v3570_v57  ;;  %v1138_v31 = vor.u32 1.1754944e-38, %v1137_v55  ;;  %vm1136_vm0 = vcmp.eq.f32.partialorder %v1135_v0, 8.507059e+37 }
 0x354   : > { %v2381_v17 = vpop.eup %2380 }
 0x355   : > { %v3583_v5 = vadd.f32 1.0, %v2381_v17  ;;  %v3585_v43 = vpop.eup %2382 }
 0x356   : > { %v1172_v30 = vmul.f32 %v3585_v43, %v3551_v15  ;;  %v1706_v9 = vpop.permute.xlu0 %1705  ;;  %vm1177_vm4 = vweird.f32 %v3585_v43 }
 0x357   : > { %v2385_v33 = vpop.eup %2384  ;;  %2390 = vrcp.f32 %v3583_v5  ;;  %v1210_v8 = vand.u32 2147483647, %v3583_v5  ;;  %v1212_v21 = vand.u32 2147483648, %v3583_v5  ;;  %vm1206_vm2 = vweird.f32 %v3583_v5  ;;  %vm3630_vm10 = vmor %vm1176_vm9, %vm1177_vm4 }
 0x358   : > { %v1127_v22 = vmul.f32 %v2385_v33, %v1090_v49  ;;  %v2387_v32 = vpop.eup %2386  ;;  %v1710_v24 = vpop.permute.xlu2 %1709  ;;  %vm1132_vm13 = vweird.f32 %v2385_v33  ;;  %v1173_v39 = vsub.f32 1.0, %v1172_v30 }
 0x359   : > { %v3595_v40 = vadd.f32 1.0, %v2387_v32  ;;  %v1729_v11 = vsel %vm912_vm3, %v1220_v7, %v1710_v24  ;;  %v3598_v14 = vpop.eup %2388  ;;  %vm1133_vm15 = vmor %vm1131_vm14, %vm1132_vm13  ;;  %v1213_v49 = vor.u32 1.1754944e-38, %v1212_v21  ;;  %vm1211_vm7 = vcmp.eq.f32.partialorder %v1210_v8, 8.507059e+37 }
 0x35a   : > { %v1128_v45 = vsub.f32 1.0, %v1127_v22  ;;  %1737 = vst.msk [vmem:[%s3578_s14 + $0x20] sm:$0xff] %vm930_vm5, %v1729_v11  ;;  %v1187_v1 = vmul.f32 %v3598_v14, %v3570_v57  ;;  %v1174_v23 = vmul.f32 %v3585_v43, %v1173_v39  ;;  %vm1181_vm14 = vcmp.eq.f32.partialorder %v1180_v59, 8.507059e+37 }
 0x35b   : > { %2392 = vrcp.f32 %v3595_v40  ;;  %v1152_v4 = vand.u32 2147483648, %v3595_v40  ;;  %v1150_v28 = vand.u32 2147483647, %v3595_v40  ;;  %vm1146_vm11 = vweird.f32 %v3595_v40 }
 0x35c   : > { %v1129_v26 = vmul.f32 %v2385_v33, %v1128_v45  ;;  %v1188_v10 = vsub.f32 1.0, %v1187_v1  ;;  %v1175_v44 = vadd.f32 %v3585_v43, %v1174_v23 }
 0x35d   : > { %v2391_v56 = vpop.eup %2390  ;;  %vm1151_vm13 = vcmp.eq.f32.partialorder %v1150_v28, 8.507059e+37 }
 0x35e   : > { %v1130_v48 = vadd.f32 %v2385_v33, %v1129_v26  ;;  %v1202_v51 = vmul.f32 %v2391_v56, %v3583_v5  ;;  %vm1207_vm1 = vweird.f32 %v2391_v56  ;;  %v1189_v2 = vmul.f32 %v3598_v14, %v1188_v10 }
 0x35f   : > { %vm1208_vm6 = vmor %vm1206_vm2, %vm1207_vm1  ;;  %v1179_v58 = vsel %vm3630_vm10, %v3585_v43, %v1175_v44  ;;  %v1197_v43 = vand.u32 2147483648, %v3570_v57  ;;  %vm1196_vm2 = vcmp.eq.f32.partialorder %v1195_v50, 8.507059e+37 }
 0x360   : > { %v1134_v36 = vsel %vm1133_vm15, %v2385_v33, %v1130_v48  ;;  %v1203_v16 = vsub.f32 1.0, %v1202_v51  ;;  %v1702_v35 = vpop.permute.xlu1 %1701  ;;  %v1190_v33 = vadd.f32 %v3598_v14, %v1189_v2  ;;  %vm1192_vm15 = vweird.f32 %v3598_v14 }
 0x361   : > { %v1139_v61 = vsel %vm1136_vm0, %v1138_v31, %v1134_v36  ;;  %v2393_v3 = vpop.eup %2392  ;;  %v1725_v53 = vsel %vm912_vm3, %v1216_v42, %v1702_v35  ;;  %vm1191_vm0 = vweird.f32 %v3570_v57 }
 0x362   : > { %v1218_v20 = vmul.f32 %v1139_v61, %v3542_v34  ;;  %v1204_v38 = vmul.f32 %v2391_v56, %v1203_v16  ;;  %v1142_v12 = vmul.f32 %v2393_v3, %v3595_v40  ;;  %1733 = vst.msk [vmem:[%s3578_s14] sm:$0xff] %vm930_vm5, %v1725_v53  ;;  %v1182_v34 = vand.u32 2147483648, %v3551_v15  ;;  %vm1193_vm1 = vmor %vm1191_vm0, %vm1192_vm15 }
 0x363   : > { %vm1147_vm8 = vweird.f32 %v2393_v3  ;;  %v1153_v15 = vor.u32 1.1754944e-38, %v1152_v4  ;;  %v1194_v45 = vsel %vm1193_vm1, %v3598_v14, %v1190_v33 }
 0x364   : > { %v1205_v29 = vadd.f32 %v2391_v56, %v1204_v38  ;;  %v1727_v54 = vsel %vm912_vm3, %v1218_v20, %v1706_v9  ;;  %v1143_v27 = vsub.f32 1.0, %v1142_v12  ;;  %vm1148_vm12 = vmor %vm1146_vm11, %vm1147_vm8  ;;  %v1183_v25 = vor.u32 1.1754944e-38, %v1182_v34 }
 0x365   : > { %1735 = vst.msk [vmem:[%s3578_s14 + $0x10] sm:$0xff] %vm930_vm5, %v1727_v54 }
 0x366   : > { %v1209_v46 = vsel %vm1208_vm6, %v2391_v56, %v1205_v29  ;;  %v1144_v13 = vmul.f32 %v2393_v3, %v1143_v27  ;;  %v1184_v22 = vsel %vm1181_vm14, %v1183_v25, %v1179_v58 }
 0x367   : > { %v1214_v6 = vsel %vm1211_vm7, %v1213_v49, %v1209_v46  ;;  %v1221_v24 = vmul.f32 %v1184_v22, %v3530_v63 }
 0x368   : > { %v1223_v17 = vmul.f32 %v1214_v6, %v3548_v19  ;;  %v1145_v47 = vadd.f32 %v2393_v3, %v1144_v13  ;;  %v1716_v5 = vpop.permute.xlu2 %1715  ;;  %v1708_v7 = vpop.permute.xlu1 %1707 }
 0x36a   : > { %v1149_v19 = vsel %vm1148_vm12, %v2393_v3, %v1145_v47  ;;  %v1732_v18 = vsel %vm912_vm3, %v1223_v17, %v1716_v5 }
 0x36b   : > { %v1154_v60 = vsel %vm1151_vm13, %v1153_v15, %v1149_v19  ;;  %1740 = vst.msk [vmem:[%s3578_s14 + $0x38] sm:$0xff] %vm930_vm5, %v1732_v18 }
 0x36c   : > { %v1219_v32 = vmul.f32 %v1154_v60, %v3554_v37  ;;  %v1198_v37 = vor.u32 1.1754944e-38, %v1197_v43 }
 0x36e   : > { %v1728_v30 = vsel %vm912_vm3, %v1219_v32, %v1708_v7  ;;  %v1199_v52 = vsel %vm1196_vm2, %v1198_v37, %v1194_v45 }
 0x36f   : > { %1736 = vst.msk [vmem:[%s3578_s14 + $0x18] sm:$0xff] %vm930_vm5, %v1728_v30  ;;  %v1222_v63 = vmul.f32 %v1199_v52, %v3538_v62 }
 0x370   : > { %v1712_v40 = vpop.permute.xlu0 %1711 }
 0x371   : > { %v1730_v57 = vsel %vm912_vm3, %v1221_v24, %v1712_v40 }
 0x372   : > { %1738 = vst.msk [vmem:[%s3578_s14 + $0x28] sm:$0xff] %vm930_vm5, %v1730_v57 }
 0x376   : > { %v1714_v55 = vpop.permute.xlu1 %1713 }
 0x377   : > { %v1731_v11 = vsel %vm912_vm3, %v1222_v63, %v1714_v55 }
 0x378   : > { %1739 = vst.msk [vmem:[%s3578_s14 + $0x30] sm:$0xff] %vm930_vm5, %v1731_v11 }
 0x379   : > { %2451 = shalt.err (!%p2448_p4)
}
 0x37a   : > { %s2511_s12 = smov 128  }
 0x37b   : > { %1899 = dma.vmem_to_hbm [thread:$0]  (%p2592_p11), %s1755_s22, 1024, %s1757_s17, %s1742_s26, %s2511_s12, %s2511_s12, %s2497_s16  }
 0x37c PF: > { %s1771_s14 = sand.u32 1, %s2478_s18   ;;  %p3719_p7 = scmp.ge.s32.totalorder %s2490_s21, 2 }
 0x37d   : > { %s1772_s23 = scalar_lea.sflag [#allocation4], %s1771_s14 }
 0x37e   : > { %p1906_p5 = pnand %p3719_p7, %p2596_p12 }
 0x380   : > { %p1907_p8 = pneg %p1906_p5 }
 0x382   : > { %2473 = dma.done.wait (%p1907_p8), %s1772_s23, 1024  }
 0x383   : > { %2475 = vsyncadd (%p1907_p8), %s1772_s23, 4294966272  ;;  %p18_p10 = scmp.ge.s32.totalorder %s2567_s24, 4   ;;  %s3720_s18 = smov %s2482_s19 }
 0x384   : > { %s3721_s19 = smov %s2486_s20  ;;  %s3722_s20 = smov %s2579_s27 }
 0x385   : > { %s3723_s21 = smov %s2567_s24  ;;  %20 = sbr.rel (!%p18_p10) target bundleno = 5 (0x5), region = 85 }
 0x38a   :  { %1778 = vsyncpa [#allocation3], 1 }
 0x38b   :  { %1780 = vsyncpa [#allocation3 + $0x1], 1 }
 0x38c   :  { %1781 = vsyncpa [#allocation4], 1 }
 0x38d   :  { %1783 = vsyncpa [#allocation4 + $0x1], 1 }

</bundles_post_ra>
